<compile_context>
chip_gen: v7x
topology: tpu7x:2x2x1
jax: 0.10.0
libtpu: 0.0.40
codegen_flags: <defaults>
</compile_context>

<pallas_src>
import jax
import jax.numpy as jnp
from jax.experimental import pallas as pl
from jax.experimental.pallas import tpu as pltpu

_LANE = 128
_BATCH_ALIGN = 16   # bf16 native sublane tile; keeps all in-kernel reshapes layout-trivial


def _round_up(x, m):
    return ((x + m - 1) // m) * m


def _pad_nd(a, target_shape):
    return jnp.pad(a, [(0, t - s) for s, t in zip(a.shape, target_shape)])


def _vmem_capacity_bytes():
    try:
        info = pltpu.get_tpu_info()
        cap = getattr(info, "vmem_capacity_bytes", None)
        if cap:
            return int(cap)
    except Exception:
        pass
    return 64 << 20   # v7x-safe fallback


def _make_rnn_kernel(num_layers, time_block, batch_block, seq_len, padded_seq_len,
                     hh_dtype):
    """One grid step = one (batch block, time block): batched projections + recurrence."""
    L, TT, BB = num_layers, time_block, batch_block
    M = TT * BB
    need_mask = padded_seq_len != seq_len

    def kernel(*refs):
        it = iter(refs)
        h0_ref = next(it)                                     # (L, BB, Hp) f32
        x_ref = next(it)                                      # (TT, BB, Ip) bf16
        layers = [(next(it), next(it), next(it)) for _ in range(L)]  # w_ih, w_hh, bias
        fc_w_ref = next(it)                                   # (Hp, Op) bf16
        fc_b_ref = next(it)                                   # (1, Op) f32
        y_ref = next(it)                                      # (TT, BB, Op) bf16
        hid_ref = next(it)                                    # (L, BB, Hp) f32 (carried)
        zbuf = next(it)                                       # (TT*BB, Hp) f32 scratch
        obuf = next(it)                                       # (TT*BB, Hp) bf16 scratch

        tb = pl.program_id(1)                                 # serial time-block index
        t0 = tb * TT

        @pl.when(tb == 0)
        def _():
            hid_ref[...] = h0_ref[...]                        # hidden carried in hid_ref

        Ip = x_ref.shape[2]
        Op = y_ref.shape[2]

        # Layer-outer / time-inner: every layer's input projection is one big matmul.
        inp2d = x_ref[...].reshape(M, Ip)                     # bf16, M = TT*BB rows

        for l, (w_ih_ref, w_hh_ref, b_ref) in enumerate(layers):
            # Batched input projection + bias for the whole time block (MXU, M ~ 1024+).
            zbuf[...] = (jnp.dot(inp2d, w_ih_ref[...],
                                 preferred_element_type=jnp.float32)
                         + b_ref[...])

            def step(s, h):
                row = pl.multiple_of(s * BB, BB)
                pre = zbuf[pl.ds(row, BB), :] + jnp.dot(
                    h.astype(hh_dtype), w_hh_ref[...],
                    preferred_element_type=jnp.float32)
                h_new = jnp.tanh(pre)                         # f32 recurrence math
                if need_mask:                                 # freeze state on padded tail
                    h_new = jnp.where(t0 + s < seq_len, h_new, h)
                obuf[pl.ds(row, BB), :] = h_new.astype(obuf.dtype)
                return h_new

            h_final = jax.lax.fori_loop(0, TT, step, hid_ref[l], unroll=8)
            hid_ref[l] = h_final
            inp2d = obuf[...]                                 # next layer / fc-head input

        # Batched fc + sigmoid head: one MXU call and one lane-dense slab store.
        logits = (jnp.dot(inp2d, fc_w_ref[...], preferred_element_type=jnp.float32)
                  + fc_b_ref[...])
        y_ref[...] = jax.nn.sigmoid(logits).reshape(TT, BB, Op).astype(y_ref.dtype)

    return kernel


def binary_sequence_rnn_forward(x, params, hidden=None, *, time_block=None,
                                batch_block=None, hh_dtype=jnp.bfloat16):
    """Pallas forward pass. x: (B, T, input_size) float32, batch_first like PyTorch.

    batch_block: leave None on single-TC parts (v5e/v6e). On v7x pass Bp//2 (multiple
                 of 16) to shard the "parallel" batch axis across the two TensorCores.
    hh_dtype:    operand dtype of the recurrent h @ W_hh matmul (bf16 = fast, f32 = exact).
    """
    B, T, I = x.shape
    L = len(params["w_ih"])
    H = params["w_hh"][0].shape[0]
    O = params["fc_w"].shape[0]

    if hidden is None:
        hidden = jnp.zeros((L, B, H), jnp.float32)

    # --- padded / blocked sizes ------------------------------------------------
    Bp = _round_up(max(B, _BATCH_ALIGN), _BATCH_ALIGN)
    Ip = _round_up(I, _LANE)
    Hp = _round_up(H, _LANE)
    Op = _round_up(O, _LANE)

    if batch_block is None:
        BB = Bp                                   # NB=1: no split on single-TC parts
    else:
        BB = _round_up(batch_block, _BATCH_ALIGN)
    Bp = _round_up(Bp, BB)
    NB = Bp // BB

    # --- generation-aware time-block / VMEM sizing ------------------------------
    vmem_cap = _vmem_capacity_bytes()
    w_bytes = 0
    for l in range(L):
        in_p = Ip if l == 0 else Hp
        w_bytes += (in_p * Hp + Hp * Hp) * 2 + Hp * 4          # bf16 weights + f32 bias
    w_bytes += Hp * Op * 2 + Op * 4
    fixed_bytes = 2 * w_bytes + 4 * L * BB * Hp * 4 + (4 << 20)  # 2x-buffered weights, h0/hid
    per_step = BB * (4 * Ip + 4 * Op + 18 * Hp)                # x/y 2x-buffered + scratch + temps

    if time_block is None:
        budget = int(0.6 * vmem_cap)
        tt_fit = max(8, ((budget - fixed_bytes) // max(per_step, 1)) // 8 * 8)
        TT = max(8, min(tt_fit, 512, _round_up(T, 8)))
    else:
        TT = _round_up(time_block, 8)
    Tp = _round_up(T, TT)
    NT = Tp // TT

    vmem_est = fixed_bytes + TT * per_step
    vmem_limit = int(min(max(vmem_est, 32 << 20), int(0.9 * vmem_cap)))

    # --- padded operands (bf16 MXU inputs, f32 biases/state) -------------------
    x_tm = jnp.transpose(x, (1, 0, 2)).astype(jnp.float32)     # (T, B, I) time-major
    x_p = _pad_nd(x_tm, (Tp, Bp, Ip)).astype(jnp.bfloat16)
    h0_p = _pad_nd(hidden.astype(jnp.float32), (L, Bp, Hp))

    inputs = [h0_p, x_p]
    in_specs = [
        pl.BlockSpec((L, BB, Hp), lambda bi, ti: (0, bi, 0)),   # h0 (resident per batch block)
        pl.BlockSpec((TT, BB, Ip), lambda bi, ti: (ti, bi, 0)),  # x: TT-step slab
    ]
    for l in range(L):
        in_p = Ip if l == 0 else Hp
        w_ih_t = _pad_nd(params["w_ih"][l].T, (in_p, Hp)).astype(jnp.bfloat16)
        w_hh_t = _pad_nd(params["w_hh"][l].T, (Hp, Hp)).astype(hh_dtype)
        bias_l = _pad_nd((params["b_ih"][l] + params["b_hh"][l]).reshape(1, H),
                         (1, Hp)).astype(jnp.float32)
        inputs += [w_ih_t, w_hh_t, bias_l]
        in_specs += [
            pl.BlockSpec((in_p, Hp), lambda bi, ti: (0, 0)),
            pl.BlockSpec((Hp, Hp), lambda bi, ti: (0, 0)),
            pl.BlockSpec((1, Hp), lambda bi, ti: (0, 0)),
        ]
    fc_w_t = _pad_nd(params["fc_w"].T, (Hp, Op)).astype(jnp.bfloat16)
    fc_b = _pad_nd(params["fc_b"].reshape(1, O), (1, Op)).astype(jnp.float32)
    inputs += [fc_w_t, fc_b]
    in_specs += [
        pl.BlockSpec((Hp, Op), lambda bi, ti: (0, 0)),
        pl.BlockSpec((1, Op), lambda bi, ti: (0, 0)),
    ]

    out_shape = (
        jax.ShapeDtypeStruct((Tp, Bp, Op), jnp.bfloat16),       # y (bf16: halve writeback)
        jax.ShapeDtypeStruct((L, Bp, Hp), jnp.float32),         # final hidden
    )
    out_specs = (
        pl.BlockSpec((TT, BB, Op), lambda bi, ti: (ti, bi, 0)),
        pl.BlockSpec((L, BB, Hp), lambda bi, ti: (0, bi, 0)),   # resident carry across ti
    )

    y_pad, hid_pad = pl.pallas_call(
        _make_rnn_kernel(L, TT, BB, T, Tp, hh_dtype),
        grid=(NB, NT),
        in_specs=in_specs,
        out_specs=out_specs,
        out_shape=out_shape,
        scratch_shapes=[
            pltpu.VMEM((TT * BB, Hp), jnp.float32),             # batched x@W_ih + bias
            pltpu.VMEM((TT * BB, Hp), jnp.bfloat16),            # per-block layer outputs
        ],
        compiler_params=pltpu.CompilerParams(
            dimension_semantics=("parallel", "arbitrary"),
            vmem_limit_bytes=vmem_limit,
        ),
    )(*inputs)

    y = jnp.transpose(y_pad[:T, :B, :O], (1, 0, 2)).astype(jnp.float32)   # (B, T, O)
    hid = hid_pad[:, :B, :H]
    return y, hid


def init_params(key, input_size, hidden_size, output_size, num_layers=1):
    """Deterministic init matching PyTorch shapes: uniform(-1/sqrt(H), 1/sqrt(H))."""
    k = 1.0 / jnp.sqrt(jnp.float32(hidden_size))
    params = {"w_ih": [], "w_hh": [], "b_ih": [], "b_hh": []}
    for l in range(num_layers):
        in_l = input_size if l == 0 else hidden_size
        key, k1, k2, k3, k4 = jax.random.split(key, 5)
        params["w_ih"].append(jax.random.uniform(k1, (hidden_size, in_l), jnp.float32, -k, k))
        params["w_hh"].append(jax.random.uniform(k2, (hidden_size, hidden_size), jnp.float32, -k, k))
        params["b_ih"].append(jax.random.uniform(k3, (hidden_size,), jnp.float32, -k, k))
        params["b_hh"].append(jax.random.uniform(k4, (hidden_size,), jnp.float32, -k, k))
    key, k5, k6 = jax.random.split(key, 3)
    params["fc_w"] = jax.random.uniform(k5, (output_size, hidden_size), jnp.float32, -k, k)
    params["fc_b"] = jax.random.uniform(k6, (output_size,), jnp.float32, -k, k)
    return params


def reference_forward(x, params, hidden=None):
    """Pure-JAX f32 reference matching nn.RNN(tanh, batch_first) + Linear + Sigmoid."""
    B, T, _ = x.shape
    L = len(params["w_ih"])
    H = params["w_hh"][0].shape[0]
    if hidden is None:
        hidden = jnp.zeros((L, B, H), jnp.float32)
    h = [hidden[l] for l in range(L)]
    outs = []
    for t in range(T):
        inp = x[:, t, :]
        for l in range(L):
            h[l] = jnp.tanh(inp @ params["w_ih"][l].T + params["b_ih"][l]
                            + h[l] @ params["w_hh"][l].T + params["b_hh"][l])
            inp = h[l]
        outs.append(inp)
    out = jnp.stack(outs, axis=1)                                 # (B, T, H)
    y = jax.nn.sigmoid(out @ params["fc_w"].T + params["fc_b"])   # (B, T, O)
    return y, jnp.stack(h, axis=0)


if __name__ == "__main__":
    B, T, I, H, O, L = 2, 8, 4, 32, 1, 1

    key = jax.random.PRNGKey(0)
    key, xk = jax.random.split(key)
    # binary-ish input sequence, shape (B, T, input_size)
    x = (jax.random.uniform(xk, (B, T, I)) > 0.5).astype(jnp.float32)

    params = init_params(key, I, H, O, num_layers=L)

    y, hid = binary_sequence_rnn_forward(x, params, hidden=None)
    y = jax.block_until_ready(y)
    hid = jax.block_until_ready(hid)

    y_ref, hid_ref = reference_forward(x, params, hidden=None)

    assert y.shape == (B, T, O) and hid.shape == (L, B, H)
    # bf16 MXU operands + bf16 y storage (with f32 accumulation and f32 recurrent state)
    # => loosened tolerance vs. the pure-f32 reference.
    assert jnp.allclose(y, y_ref, atol=2e-2), float(jnp.max(jnp.abs(y - y_ref)))
    assert jnp.allclose(hid, hid_ref, atol=5e-2), float(jnp.max(jnp.abs(hid - hid_ref)))

    print("KERNEL_OK")
</pallas_src>

<mosaic_0001>
module attributes {stable_mosaic.version = 11 : i64} {
  func.func @kernel(%arg0: i32, %arg1: i32, %arg2: memref<1x16x128xf32, #tpu.memory_space<vmem>>, %arg3: memref<8x16x128xbf16, #tpu.memory_space<vmem>>, %arg4: memref<128x128xbf16, #tpu.memory_space<vmem>>, %arg5: memref<128x128xbf16, #tpu.memory_space<vmem>>, %arg6: memref<1x128xf32, #tpu.memory_space<vmem>>, %arg7: memref<128x128xbf16, #tpu.memory_space<vmem>>, %arg8: memref<1x128xf32, #tpu.memory_space<vmem>>, %arg9: memref<8x16x128xbf16, #tpu.memory_space<vmem>>, %arg10: memref<1x16x128xf32, #tpu.memory_space<vmem>>, %arg11: memref<128x128xf32, #tpu.memory_space<vmem>>, %arg12: memref<128x128xbf16, #tpu.memory_space<vmem>>) attributes {dimension_semantics = [#tpu.dimension_semantics<parallel>, #tpu.dimension_semantics<arbitrary>], iteration_bounds = array<i64: 1, 1>, scalar_prefetch = 0 : i64, scratch_operands = 2 : i64, tpu.core_type = #tpu.core_type<tc>, window_params = [{transform_indices = @transform_0, window_bounds = array<i64: 1, 16, 128>}, {transform_indices = @transform_1, window_bounds = array<i64: 8, 16, 128>}, {pipeline_mode = #tpu.pipeline_mode<synchronous>, transform_indices = @transform_2, window_bounds = array<i64: 128, 128>}, {pipeline_mode = #tpu.pipeline_mode<synchronous>, transform_indices = @transform_3, window_bounds = array<i64: 128, 128>}, {pipeline_mode = #tpu.pipeline_mode<synchronous>, transform_indices = @transform_4, window_bounds = array<i64: 1, 128>}, {pipeline_mode = #tpu.pipeline_mode<synchronous>, transform_indices = @transform_5, window_bounds = array<i64: 128, 128>}, {pipeline_mode = #tpu.pipeline_mode<synchronous>, transform_indices = @transform_6, window_bounds = array<i64: 1, 128>}, {transform_indices = @transform_7, window_bounds = array<i64: 8, 16, 128>}, {transform_indices = @transform_8, window_bounds = array<i64: 1, 16, 128>}]} {
    %c0_i32 = arith.constant 0 : i32
    %0 = arith.cmpi eq, %arg1, %c0_i32 : i32
    %1 = arith.extui %0 : i1 to i32
    %c0_i32_0 = arith.constant 0 : i32
    %2 = arith.cmpi ne, %1, %c0_i32_0 : i32
    scf.if %2 {
      %c0_74 = arith.constant 0 : index
      %c0_75 = arith.constant 0 : index
      %c0_76 = arith.constant 0 : index
      %126 = vector.load %arg2[%c0_74, %c0_75, %c0_76] : memref<1x16x128xf32, #tpu.memory_space<vmem>>, vector<1x16x128xf32>
      %c0_77 = arith.constant 0 : index
      %c0_78 = arith.constant 0 : index
      %c0_79 = arith.constant 0 : index
      %127 = vector.load %arg10[%c0_77, %c0_78, %c0_79] : memref<1x16x128xf32, #tpu.memory_space<vmem>>, vector<1x16x128xf32>
      tpu.vector_store %arg10[%c0_77, %c0_78, %c0_79], %126 {strides = array<i32>} : memref<1x16x128xf32, #tpu.memory_space<vmem>>, vector<1x16x128xf32>,
    } else {
    }
    %c0 = arith.constant 0 : index
    %c0_1 = arith.constant 0 : index
    %c0_2 = arith.constant 0 : index
    %3 = vector.load %arg3[%c0, %c0_1, %c0_2] : memref<8x16x128xbf16, #tpu.memory_space<vmem>>, vector<8x16x128xbf16>
    %4 = vector.shape_cast %3 : vector<8x16x128xbf16> to vector<128x128xbf16>
    %c0_3 = arith.constant 0 : index
    %c0_4 = arith.constant 0 : index
    %5 = vector.load %arg4[%c0_3, %c0_4] : memref<128x128xbf16, #tpu.memory_space<vmem>>, vector<128x128xbf16>
    %cst = arith.constant dense<0.000000e+00> : vector<128x128xf32>
    %6 = tpu.matmul %4, %5, %cst {dimension_numbers = #tpu.dot_dimension_numbers<[1], [0], [0], [1], [0, 0, 1, 1], [], []>} : vector<128x128xbf16>, vector<128x128xbf16>, vector<128x128xf32> -> vector<128x128xf32>
    %c0_5 = arith.constant 0 : index
    %c0_6 = arith.constant 0 : index
    %7 = vector.load %arg6[%c0_5, %c0_6] : memref<1x128xf32, #tpu.memory_space<vmem>>, vector<1x128xf32>
    %8 = vector.broadcast %7 : vector<1x128xf32> to vector<128x128xf32>
    %9 = arith.addf %6, %8 : vector<128x128xf32>
    %c0_7 = arith.constant 0 : index
    %c0_8 = arith.constant 0 : index
    %10 = vector.load %arg11[%c0_7, %c0_8] : memref<128x128xf32, #tpu.memory_space<vmem>>, vector<128x128xf32>
    tpu.vector_store %arg11[%c0_7, %c0_8], %9 {strides = array<i32>} : memref<128x128xf32, #tpu.memory_space<vmem>>, vector<128x128xf32>,
    %c0_9 = arith.constant 0 : index
    %c0_10 = arith.constant 0 : index
    %c0_11 = arith.constant 0 : index
    %11 = vector.load %arg10[%c0_9, %c0_10, %c0_11] : memref<1x16x128xf32, #tpu.memory_space<vmem>>, vector<1x16x128xf32>
    %12 = vector.shape_cast %11 : vector<1x16x128xf32> to vector<16x128xf32>
    %c0_i32_12 = arith.constant 0 : i32
    %c16_i32 = arith.constant 16 : i32
    %13 = arith.muli %c0_i32_12, %c16_i32 : i32
    %14 = tpu.assume_multiple %13, 16 : i32
    %15 = arith.index_cast %14 : i32 to index
    %c0_13 = arith.constant 0 : index
    %16 = vector.load %arg11[%15, %c0_13] : memref<128x128xf32, #tpu.memory_space<vmem>>, vector<16x128xf32>
    %17 = arith.truncf %12 : vector<16x128xf32> to vector<16x128xbf16>
    %c0_14 = arith.constant 0 : index
    %c0_15 = arith.constant 0 : index
    %18 = vector.load %arg5[%c0_14, %c0_15] : memref<128x128xbf16, #tpu.memory_space<vmem>>, vector<128x128xbf16>
    %cst_16 = arith.constant dense<0.000000e+00> : vector<16x128xf32>
    %19 = tpu.matmul %17, %18, %cst_16 {dimension_numbers = #tpu.dot_dimension_numbers<[1], [0], [0], [1], [0, 0, 1, 1], [], []>} : vector<16x128xbf16>, vector<128x128xbf16>, vector<16x128xf32> -> vector<16x128xf32>
    %20 = arith.addf %16, %19 : vector<16x128xf32>
    %21 = math.tanh %20 : vector<16x128xf32>
    %22 = arith.truncf %21 : vector<16x128xf32> to vector<16x128xbf16>
    %23 = arith.index_cast %14 : i32 to index
    %c0_17 = arith.constant 0 : index
    %24 = vector.load %arg12[%23, %c0_17] : memref<128x128xbf16, #tpu.memory_space<vmem>>, vector<16x128xbf16>
    tpu.vector_store %arg12[%23, %c0_17], %22 {strides = array<i32>} : memref<128x128xbf16, #tpu.memory_space<vmem>>, vector<16x128xbf16>,
    %c1_i32 = arith.constant 1 : i32
    %c16_i32_18 = arith.constant 16 : i32
    %25 = arith.muli %c1_i32, %c16_i32_18 : i32
    %26 = tpu.assume_multiple %25, 16 : i32
    %27 = arith.index_cast %26 : i32 to index
    %c0_19 = arith.constant 0 : index
    %28 = vector.load %arg11[%27, %c0_19] : memref<128x128xf32, #tpu.memory_space<vmem>>, vector<16x128xf32>
    %29 = arith.truncf %21 : vector<16x128xf32> to vector<16x128xbf16>
    %c0_20 = arith.constant 0 : index
    %c0_21 = arith.constant 0 : index
    %30 = vector.load %arg5[%c0_20, %c0_21] : memref<128x128xbf16, #tpu.memory_space<vmem>>, vector<128x128xbf16>
    %cst_22 = arith.constant dense<0.000000e+00> : vector<16x128xf32>
    %31 = tpu.matmul %29, %30, %cst_22 {dimension_numbers = #tpu.dot_dimension_numbers<[1], [0], [0], [1], [0, 0, 1, 1], [], []>} : vector<16x128xbf16>, vector<128x128xbf16>, vector<16x128xf32> -> vector<16x128xf32>
    %32 = arith.addf %28, %31 : vector<16x128xf32>
    %33 = math.tanh %32 : vector<16x128xf32>
    %34 = arith.truncf %33 : vector<16x128xf32> to vector<16x128xbf16>
    %35 = arith.index_cast %26 : i32 to index
    %c0_23 = arith.constant 0 : index
    %36 = vector.load %arg12[%35, %c0_23] : memref<128x128xbf16, #tpu.memory_space<vmem>>, vector<16x128xbf16>
    tpu.vector_store %arg12[%35, %c0_23], %34 {strides = array<i32>} : memref<128x128xbf16, #tpu.memory_space<vmem>>, vector<16x128xbf16>,
    %c2_i32 = arith.constant 2 : i32
    %c16_i32_24 = arith.constant 16 : i32
    %37 = arith.muli %c2_i32, %c16_i32_24 : i32
    %38 = tpu.assume_multiple %37, 16 : i32
    %39 = arith.index_cast %38 : i32 to index
    %c0_25 = arith.constant 0 : index
    %40 = vector.load %arg11[%39, %c0_25] : memref<128x128xf32, #tpu.memory_space<vmem>>, vector<16x128xf32>
    %41 = arith.truncf %33 : vector<16x128xf32> to vector<16x128xbf16>
    %c0_26 = arith.constant 0 : index
    %c0_27 = arith.constant 0 : index
    %42 = vector.load %arg5[%c0_26, %c0_27] : memref<128x128xbf16, #tpu.memory_space<vmem>>, vector<128x128xbf16>
    %cst_28 = arith.constant dense<0.000000e+00> : vector<16x128xf32>
    %43 = tpu.matmul %41, %42, %cst_28 {dimension_numbers = #tpu.dot_dimension_numbers<[1], [0], [0], [1], [0, 0, 1, 1], [], []>} : vector<16x128xbf16>, vector<128x128xbf16>, vector<16x128xf32> -> vector<16x128xf32>
    %44 = arith.addf %40, %43 : vector<16x128xf32>
    %45 = math.tanh %44 : vector<16x128xf32>
    %46 = arith.truncf %45 : vector<16x128xf32> to vector<16x128xbf16>
    %47 = arith.index_cast %38 : i32 to index
    %c0_29 = arith.constant 0 : index
    %48 = vector.load %arg12[%47, %c0_29] : memref<128x128xbf16, #tpu.memory_space<vmem>>, vector<16x128xbf16>
    tpu.vector_store %arg12[%47, %c0_29], %46 {strides = array<i32>} : memref<128x128xbf16, #tpu.memory_space<vmem>>, vector<16x128xbf16>,
    %c3_i32 = arith.constant 3 : i32
    %c16_i32_30 = arith.constant 16 : i32
    %49 = arith.muli %c3_i32, %c16_i32_30 : i32
    %50 = tpu.assume_multiple %49, 16 : i32
    %51 = arith.index_cast %50 : i32 to index
    %c0_31 = arith.constant 0 : index
    %52 = vector.load %arg11[%51, %c0_31] : memref<128x128xf32, #tpu.memory_space<vmem>>, vector<16x128xf32>
    %53 = arith.truncf %45 : vector<16x128xf32> to vector<16x128xbf16>
    %c0_32 = arith.constant 0 : index
    %c0_33 = arith.constant 0 : index
    %54 = vector.load %arg5[%c0_32, %c0_33] : memref<128x128xbf16, #tpu.memory_space<vmem>>, vector<128x128xbf16>
    %cst_34 = arith.constant dense<0.000000e+00> : vector<16x128xf32>
    %55 = tpu.matmul %53, %54, %cst_34 {dimension_numbers = #tpu.dot_dimension_numbers<[1], [0], [0], [1], [0, 0, 1, 1], [], []>} : vector<16x128xbf16>, vector<128x128xbf16>, vector<16x128xf32> -> vector<16x128xf32>
    %56 = arith.addf %52, %55 : vector<16x128xf32>
    %57 = math.tanh %56 : vector<16x128xf32>
    %58 = arith.truncf %57 : vector<16x128xf32> to vector<16x128xbf16>
    %59 = arith.index_cast %50 : i32 to index
    %c0_35 = arith.constant 0 : index
    %60 = vector.load %arg12[%59, %c0_35] : memref<128x128xbf16, #tpu.memory_space<vmem>>, vector<16x128xbf16>
    tpu.vector_store %arg12[%59, %c0_35], %58 {strides = array<i32>} : memref<128x128xbf16, #tpu.memory_space<vmem>>, vector<16x128xbf16>,
    %c4_i32 = arith.constant 4 : i32
    %c16_i32_36 = arith.constant 16 : i32
    %61 = arith.muli %c4_i32, %c16_i32_36 : i32
    %62 = tpu.assume_multiple %61, 16 : i32
    %63 = arith.index_cast %62 : i32 to index
    %c0_37 = arith.constant 0 : index
    %64 = vector.load %arg11[%63, %c0_37] : memref<128x128xf32, #tpu.memory_space<vmem>>, vector<16x128xf32>
    %65 = arith.truncf %57 : vector<16x128xf32> to vector<16x128xbf16>
    %c0_38 = arith.constant 0 : index
    %c0_39 = arith.constant 0 : index
    %66 = vector.load %arg5[%c0_38, %c0_39] : memref<128x128xbf16, #tpu.memory_space<vmem>>, vector<128x128xbf16>
    %cst_40 = arith.constant dense<0.000000e+00> : vector<16x128xf32>
    %67 = tpu.matmul %65, %66, %cst_40 {dimension_numbers = #tpu.dot_dimension_numbers<[1], [0], [0], [1], [0, 0, 1, 1], [], []>} : vector<16x128xbf16>, vector<128x128xbf16>, vector<16x128xf32> -> vector<16x128xf32>
    %68 = arith.addf %64, %67 : vector<16x128xf32>
    %69 = math.tanh %68 : vector<16x128xf32>
    %70 = arith.truncf %69 : vector<16x128xf32> to vector<16x128xbf16>
    %71 = arith.index_cast %62 : i32 to index
    %c0_41 = arith.constant 0 : index
    %72 = vector.load %arg12[%71, %c0_41] : memref<128x128xbf16, #tpu.memory_space<vmem>>, vector<16x128xbf16>
    tpu.vector_store %arg12[%71, %c0_41], %70 {strides = array<i32>} : memref<128x128xbf16, #tpu.memory_space<vmem>>, vector<16x128xbf16>,
    %c5_i32 = arith.constant 5 : i32
    %c16_i32_42 = arith.constant 16 : i32
    %73 = arith.muli %c5_i32, %c16_i32_42 : i32
    %74 = tpu.assume_multiple %73, 16 : i32
    %75 = arith.index_cast %74 : i32 to index
    %c0_43 = arith.constant 0 : index
    %76 = vector.load %arg11[%75, %c0_43] : memref<128x128xf32, #tpu.memory_space<vmem>>, vector<16x128xf32>
    %77 = arith.truncf %69 : vector<16x128xf32> to vector<16x128xbf16>
    %c0_44 = arith.constant 0 : index
    %c0_45 = arith.constant 0 : index
    %78 = vector.load %arg5[%c0_44, %c0_45] : memref<128x128xbf16, #tpu.memory_space<vmem>>, vector<128x128xbf16>
    %cst_46 = arith.constant dense<0.000000e+00> : vector<16x128xf32>
    %79 = tpu.matmul %77, %78, %cst_46 {dimension_numbers = #tpu.dot_dimension_numbers<[1], [0], [0], [1], [0, 0, 1, 1], [], []>} : vector<16x128xbf16>, vector<128x128xbf16>, vector<16x128xf32> -> vector<16x128xf32>
    %80 = arith.addf %76, %79 : vector<16x128xf32>
    %81 = math.tanh %80 : vector<16x128xf32>
    %82 = arith.truncf %81 : vector<16x128xf32> to vector<16x128xbf16>
    %83 = arith.index_cast %74 : i32 to index
    %c0_47 = arith.constant 0 : index
    %84 = vector.load %arg12[%83, %c0_47] : memref<128x128xbf16, #tpu.memory_space<vmem>>, vector<16x128xbf16>
    tpu.vector_store %arg12[%83, %c0_47], %82 {strides = array<i32>} : memref<128x128xbf16, #tpu.memory_space<vmem>>, vector<16x128xbf16>,
    %c6_i32 = arith.constant 6 : i32
    %c16_i32_48 = arith.constant 16 : i32
    %85 = arith.muli %c6_i32, %c16_i32_48 : i32
    %86 = tpu.assume_multiple %85, 16 : i32
    %87 = arith.index_cast %86 : i32 to index
    %c0_49 = arith.constant 0 : index
    %88 = vector.load %arg11[%87, %c0_49] : memref<128x128xf32, #tpu.memory_space<vmem>>, vector<16x128xf32>
    %89 = arith.truncf %81 : vector<16x128xf32> to vector<16x128xbf16>
    %c0_50 = arith.constant 0 : index
    %c0_51 = arith.constant 0 : index
    %90 = vector.load %arg5[%c0_50, %c0_51] : memref<128x128xbf16, #tpu.memory_space<vmem>>, vector<128x128xbf16>
    %cst_52 = arith.constant dense<0.000000e+00> : vector<16x128xf32>
    %91 = tpu.matmul %89, %90, %cst_52 {dimension_numbers = #tpu.dot_dimension_numbers<[1], [0], [0], [1], [0, 0, 1, 1], [], []>} : vector<16x128xbf16>, vector<128x128xbf16>, vector<16x128xf32> -> vector<16x128xf32>
    %92 = arith.addf %88, %91 : vector<16x128xf32>
    %93 = math.tanh %92 : vector<16x128xf32>
    %94 = arith.truncf %93 : vector<16x128xf32> to vector<16x128xbf16>
    %95 = arith.index_cast %86 : i32 to index
    %c0_53 = arith.constant 0 : index
    %96 = vector.load %arg12[%95, %c0_53] : memref<128x128xbf16, #tpu.memory_space<vmem>>, vector<16x128xbf16>
    tpu.vector_store %arg12[%95, %c0_53], %94 {strides = array<i32>} : memref<128x128xbf16, #tpu.memory_space<vmem>>, vector<16x128xbf16>,
    %c7_i32 = arith.constant 7 : i32
    %c16_i32_54 = arith.constant 16 : i32
    %97 = arith.muli %c7_i32, %c16_i32_54 : i32
    %98 = tpu.assume_multiple %97, 16 : i32
    %99 = arith.index_cast %98 : i32 to index
    %c0_55 = arith.constant 0 : index
    %100 = vector.load %arg11[%99, %c0_55] : memref<128x128xf32, #tpu.memory_space<vmem>>, vector<16x128xf32>
    %101 = arith.truncf %93 : vector<16x128xf32> to vector<16x128xbf16>
    %c0_56 = arith.constant 0 : index
    %c0_57 = arith.constant 0 : index
    %102 = vector.load %arg5[%c0_56, %c0_57] : memref<128x128xbf16, #tpu.memory_space<vmem>>, vector<128x128xbf16>
    %cst_58 = arith.constant dense<0.000000e+00> : vector<16x128xf32>
    %103 = tpu.matmul %101, %102, %cst_58 {dimension_numbers = #tpu.dot_dimension_numbers<[1], [0], [0], [1], [0, 0, 1, 1], [], []>} : vector<16x128xbf16>, vector<128x128xbf16>, vector<16x128xf32> -> vector<16x128xf32>
    %104 = arith.addf %100, %103 : vector<16x128xf32>
    %105 = math.tanh %104 : vector<16x128xf32>
    %106 = arith.truncf %105 : vector<16x128xf32> to vector<16x128xbf16>
    %107 = arith.index_cast %98 : i32 to index
    %c0_59 = arith.constant 0 : index
    %108 = vector.load %arg12[%107, %c0_59] : memref<128x128xbf16, #tpu.memory_space<vmem>>, vector<16x128xbf16>
    tpu.vector_store %arg12[%107, %c0_59], %106 {strides = array<i32>} : memref<128x128xbf16, #tpu.memory_space<vmem>>, vector<16x128xbf16>,
    %c8_i32 = arith.constant 8 : i32
    %c0_60 = arith.constant 0 : index
    %c0_61 = arith.constant 0 : index
    %c0_62 = arith.constant 0 : index
    %109 = vector.load %arg10[%c0_60, %c0_61, %c0_62] : memref<1x16x128xf32, #tpu.memory_space<vmem>>, vector<1x16x128xf32>
    %110 = vector.shape_cast %109 : vector<1x16x128xf32> to vector<16x128xf32>
    %111 = vector.shape_cast %105 : vector<16x128xf32> to vector<1x16x128xf32>
    tpu.vector_store %arg10[%c0_60, %c0_61, %c0_62], %111 {strides = array<i32>} : memref<1x16x128xf32, #tpu.memory_space<vmem>>, vector<1x16x128xf32>,
    %c0_63 = arith.constant 0 : index
    %c0_64 = arith.constant 0 : index
    %112 = vector.load %arg12[%c0_63, %c0_64] : memref<128x128xbf16, #tpu.memory_space<vmem>>, vector<128x128xbf16>
    %c0_65 = arith.constant 0 : index
    %c0_66 = arith.constant 0 : index
    %113 = vector.load %arg7[%c0_65, %c0_66] : memref<128x128xbf16, #tpu.memory_space<vmem>>, vector<128x128xbf16>
    %cst_67 = arith.constant dense<0.000000e+00> : vector<128x128xf32>
    %114 = tpu.matmul %112, %113, %cst_67 {dimension_numbers = #tpu.dot_dimension_numbers<[1], [0], [0], [1], [0, 0, 1, 1], [], []>} : vector<128x128xbf16>, vector<128x128xbf16>, vector<128x128xf32> -> vector<128x128xf32>
    %c0_68 = arith.constant 0 : index
    %c0_69 = arith.constant 0 : index
    %115 = vector.load %arg8[%c0_68, %c0_69] : memref<1x128xf32, #tpu.memory_space<vmem>>, vector<1x128xf32>
    %116 = vector.broadcast %115 : vector<1x128xf32> to vector<128x128xf32>
    %117 = arith.addf %114, %116 : vector<128x128xf32>
    %118 = arith.negf %117 : vector<128x128xf32>
    %119 = math.exp %118 : vector<128x128xf32>
    %cst_70 = arith.constant 1.000000e+00 : f32
    %120 = vector.broadcast %cst_70 : f32 to vector<128x128xf32>
    %121 = arith.addf %120, %119 : vector<128x128xf32>
    %122 = arith.divf %120, %121 : vector<128x128xf32>
    %123 = vector.shape_cast %122 : vector<128x128xf32> to vector<8x16x128xf32>
    %124 = arith.truncf %123 : vector<8x16x128xf32> to vector<8x16x128xbf16>
    %c0_71 = arith.constant 0 : index
    %c0_72 = arith.constant 0 : index
    %c0_73 = arith.constant 0 : index
    %125 = vector.load %arg9[%c0_71, %c0_72, %c0_73] : memref<8x16x128xbf16, #tpu.memory_space<vmem>>, vector<8x16x128xbf16>
    tpu.vector_store %arg9[%c0_71, %c0_72, %c0_73], %124 {strides = array<i32>} : memref<8x16x128xbf16, #tpu.memory_space<vmem>>, vector<8x16x128xbf16>,
    return
  }
  func.func @transform_0(%arg0: i32, %arg1: i32) -> (i32, i32, i32) {
    %c0_i32 = arith.constant 0 : i32
    %c0_i32_0 = arith.constant 0 : i32
    %c0_i32_1 = arith.constant 0 : i32
    return %c0_i32, %arg0, %c0_i32_0 : i32, i32, i32
  }
  func.func @transform_1(%arg0: i32, %arg1: i32) -> (i32, i32, i32) {
    %c0_i32 = arith.constant 0 : i32
    %c0_i32_0 = arith.constant 0 : i32
    return %arg1, %arg0, %c0_i32 : i32, i32, i32
  }
  func.func @transform_2(%arg0: i32, %arg1: i32) -> (i32, i32) {
    %c0_i32 = arith.constant 0 : i32
    %c0_i32_0 = arith.constant 0 : i32
    %c0_i32_1 = arith.constant 0 : i32
    return %c0_i32, %c0_i32_0 : i32, i32
  }
  func.func @transform_3(%arg0: i32, %arg1: i32) -> (i32, i32) {
    %c0_i32 = arith.constant 0 : i32
    %c0_i32_0 = arith.constant 0 : i32
    %c0_i32_1 = arith.constant 0 : i32
    return %c0_i32, %c0_i32_0 : i32, i32
  }
  func.func @transform_4(%arg0: i32, %arg1: i32) -> (i32, i32) {
    %c0_i32 = arith.constant 0 : i32
    %c0_i32_0 = arith.constant 0 : i32
    %c0_i32_1 = arith.constant 0 : i32
    return %c0_i32, %c0_i32_0 : i32, i32
  }
  func.func @transform_5(%arg0: i32, %arg1: i32) -> (i32, i32) {
    %c0_i32 = arith.constant 0 : i32
    %c0_i32_0 = arith.constant 0 : i32
    %c0_i32_1 = arith.constant 0 : i32
    return %c0_i32, %c0_i32_0 : i32, i32
  }
  func.func @transform_6(%arg0: i32, %arg1: i32) -> (i32, i32) {
    %c0_i32 = arith.constant 0 : i32
    %c0_i32_0 = arith.constant 0 : i32
    %c0_i32_1 = arith.constant 0 : i32
    return %c0_i32, %c0_i32_0 : i32, i32
  }
  func.func @transform_7(%arg0: i32, %arg1: i32) -> (i32, i32, i32) {
    %c0_i32 = arith.constant 0 : i32
    %c0_i32_0 = arith.constant 0 : i32
    return %arg1, %arg0, %c0_i32 : i32, i32, i32
  }
  func.func @transform_8(%arg0: i32, %arg1: i32) -> (i32, i32, i32) {
    %c0_i32 = arith.constant 0 : i32
    %c0_i32_0 = arith.constant 0 : i32
    %c0_i32_1 = arith.constant 0 : i32
    return %c0_i32, %arg0, %c0_i32_0 : i32, i32, i32
  }
}

</mosaic_0001>

<bundles_post_ra>
// kernel: tpu_custom_call.1
= control target key start
LH: loop header
LB: loop body
LE: loop exit
PB: predicated region body
PF: predicated region fallthrough
CT: control target
= control target key end

     0   :  { %14 = vsyncpa [#allocation5], 0  ;;  %s2880_s0 = inlined_call_operand.hbm [shape: f32[1,16,128], index: 0, kind: input, shape index: {}]   ;;  %s2881_s1 = inlined_call_operand.hbm [shape: bf16[8,16,128], index: 1, kind: input, shape index: {}]   ;;  %s2882_s2 = inlined_call_operand.hbm [shape: bf16[128,128], index: 2, kind: input, shape index: {}]   ;;  %s2883_s3 = inlined_call_operand.hbm [shape: bf16[128,128], index: 3, kind: input, shape index: {}]   ;;  %s2884_s4 = inlined_call_operand.vmem [shape: f32[1,128], index: 4, kind: input, shape index: {}]   ;;  %s2885_s5 = inlined_call_operand.hbm [shape: bf16[128,128], index: 5, kind: input, shape index: {}]   ;;  %s2886_s6 = inlined_call_operand.vmem [shape: f32[1,128], index: 6, kind: input, shape index: {}]   ;;  %s2887_s7 = inlined_call_operand.hbm [shape: bf16[8,16,128], index: 7, kind: output, shape index: {0}]   ;;  %s2888_s8 = inlined_call_operand.hbm [shape: f32[1,16,128], index: 8, kind: output, shape index: {1}]  }
   0x1   :  { %15 = vsyncpa [#allocation8], 0 }
   0x2   :  { %16 = vsyncpa [#allocation11], 0 }
   0x3   :  { %17 = vsyncpa [#allocation6], 0 }
   0x4   :  { %18 = vsyncpa [#allocation15], 0  ;;  %s2539_s27 = smov [#allocation7]   ;;  %s2375_s9 = scalar_lea.hbm %s2881_s1, 1024 }
   0x5   :  { %s36_s28 = sshll.u32 %s2539_s27, 4  ;;  %p2376_p0 = scmp.ne.s32.totalorder %s2881_s1, %s2375_s9  ;;  %s37_s28 = int_to_ptr.vmem [resolvable:$true] %s36_s28 }
   0x6   :  { %p2379_p1 = scmp.lt.u32.totalorder %s2375_s9, %s2881_s1 }
   0x8   :  { %p2381_p2 = pnand %p2379_p1, %p2376_p0 }
   0xa   :  { %2384 = shalt.err (!%p2381_p2)
}
   0xb   :  { %s2385_s14 = scalar_lea.vmem %s37_s28, 1024  ;;  %p2390_p4 = scmp.lt.s32.totalorder %s37_s28, %s37_s28 }
   0xc   :  { %p2386_p3 = scmp.ne.s32.totalorder %s37_s28, %s2385_s14  ;;  %p2391_p5 = scmp.lt.s32.totalorder %s2385_s14, %s2385_s14 }
   0xe   :  { %p2392_p6 = por %p2391_p5, %p2390_p4 }
  0x10   :  { %p2393_p7 = pnand %p2392_p6, %p2386_p3 }
  0x12   :  { %2396 = shalt.err (!%p2393_p7)
}
  0x13   :  { %s2540_s15 = smov 64   ;;  %s2541_s16 = smov 4  }
  0x14   :  { %42 = dma.hbm_to_vmem [thread:$0]  %s2881_s1, 1024, %s37_s28, [#allocation8], %s2540_s15, %s2540_s15, %s2541_s16  }
  0x15   :  { %s2542_s19 = smov [#allocation10]   ;;  %s2543_s21 = smov [#allocation4]  }
  0x16   :  { %s60_s20 = sshll.u32 %s2542_s19, 4  ;;  %s24_s22 = sshll.u32 %s2543_s21, 4  ;;  %s61_s20 = int_to_ptr.vmem [resolvable:$true] %s60_s20  ;;  %s25_s22 = int_to_ptr.vmem [resolvable:$true] %s24_s22 }
  0x17   :  { %s2397_s25 = scalar_lea.hbm %s2883_s3, 1024 }
  0x18   :  { %p2398_p8 = scmp.ne.s32.totalorder %s2883_s3, %s2397_s25  ;;  %p2401_p9 = scmp.lt.u32.totalorder %s2397_s25, %s2883_s3 }
  0x1a   :  { %p2403_p10 = pnand %p2401_p9, %p2398_p8 }
  0x1c   :  { %2406 = shalt.err (!%p2403_p10)
}
  0x1d   :  { %s2407_s1 = scalar_lea.vmem %s61_s20, 1024  ;;  %p2412_p12 = scmp.lt.s32.totalorder %s61_s20, %s61_s20 }
  0x1e   :  { %p2408_p11 = scmp.ne.s32.totalorder %s61_s20, %s2407_s1  ;;  %p2413_p13 = scmp.lt.s32.totalorder %s2407_s1, %s2407_s1 }
  0x20   :  { %p2414_p0 = por %p2413_p13, %p2412_p12 }
  0x22   :  { %p2415_p1 = pnand %p2414_p0, %p2408_p11 }
  0x24   :  { %2418 = shalt.err (!%p2415_p1)
}
  0x25   :  { %66 = dma.hbm_to_vmem [thread:$0]  %s2883_s3, 1024, %s61_s20, [#allocation11], %s2540_s15, %s2540_s15, %s2541_s16  }
  0x26   :  { %s2419_s12 = scalar_lea.hbm %s2880_s0, 256 }
  0x27   :  { %p2420_p2 = scmp.ne.s32.totalorder %s2880_s0, %s2419_s12  ;;  %p2423_p3 = scmp.lt.u32.totalorder %s2419_s12, %s2880_s0 }
  0x29   :  { %p2425_p4 = pnand %p2423_p3, %p2420_p2 }
  0x2b   :  { %2428 = shalt.err (!%p2425_p4)
}
  0x2c   :  { %s2429_s19 = scalar_lea.vmem %s25_s22, 256  ;;  %p2434_p6 = scmp.lt.s32.totalorder %s25_s22, %s25_s22 }
  0x2d   :  { %p2430_p5 = scmp.ne.s32.totalorder %s25_s22, %s2429_s19  ;;  %p2435_p7 = scmp.lt.s32.totalorder %s2429_s19, %s2429_s19 }
  0x2f   :  { %p2436_p8 = por %p2435_p7, %p2434_p6 }
  0x31   :  { %p2437_p9 = pnand %p2436_p8, %p2430_p5 }
  0x33   :  { %2440 = shalt.err (!%p2437_p9)
}
  0x34   :  { %s2544_s3 = smov 128   ;;  %s2545_s20 = smov 8  }
  0x35   :  { %30 = dma.hbm_to_vmem [thread:$0]  %s2880_s0, 256, %s25_s22, [#allocation5], %s2544_s3, %s2544_s3, %s2545_s20  }
  0x36   :  { %s2546_s24 = smov [#allocation9]   ;;  %s2547_s26 = smov [#allocation12]  }
  0x37   :  { %s48_s25 = sshll.u32 %s2546_s24, 4  ;;  %s74_s27 = sshll.u32 %s2547_s26, 4  ;;  %s49_s25 = int_to_ptr.vmem [resolvable:$true] %s48_s25  ;;  %s75_s27 = int_to_ptr.vmem [resolvable:$true] %s74_s27 }
  0x38   :  { %s2441_s1 = scalar_lea.hbm %s2882_s2, 1024 }
  0x39   :  { %p2442_p10 = scmp.ne.s32.totalorder %s2882_s2, %s2441_s1  ;;  %p2445_p11 = scmp.lt.u32.totalorder %s2441_s1, %s2882_s2 }
  0x3b   :  { %p2447_p12 = pnand %p2445_p11, %p2442_p10 }
  0x3d   :  { %2450 = shalt.err (!%p2447_p12)
}
  0x3e   :  { %s2451_s0 = scalar_lea.vmem %s49_s25, 1024  ;;  %p2456_p0 = scmp.lt.s32.totalorder %s49_s25, %s49_s25 }
  0x3f   :  { %p2452_p13 = scmp.ne.s32.totalorder %s49_s25, %s2451_s0  ;;  %p2457_p1 = scmp.lt.s32.totalorder %s2451_s0, %s2451_s0 }
  0x41   :  { %p2458_p2 = por %p2457_p1, %p2456_p0 }
  0x43   :  { %p2459_p3 = pnand %p2458_p2, %p2452_p13 }
  0x45   :  { %2462 = shalt.err (!%p2459_p3)
}
  0x46   :  { %54 = dma.hbm_to_vmem [thread:$0]  %s2882_s2, 1024, %s49_s25, [#allocation8], %s2540_s15, %s2540_s15, %s2541_s16  }
  0x47   :  { %s2463_s17 = scalar_lea.hbm %s2885_s5, 1024 }
  0x48   :  { %p2464_p4 = scmp.ne.s32.totalorder %s2885_s5, %s2463_s17  ;;  %p2467_p5 = scmp.lt.u32.totalorder %s2463_s17, %s2885_s5 }
  0x4a   :  { %p2469_p6 = pnand %p2467_p5, %p2464_p4 }
  0x4c   :  { %2472 = shalt.err (!%p2469_p6)
}
  0x4d   :  { %s2473_s24 = scalar_lea.vmem %s75_s27, 1024  ;;  %p2478_p8 = scmp.lt.s32.totalorder %s75_s27, %s75_s27 }
  0x4e   :  { %p2474_p7 = scmp.ne.s32.totalorder %s75_s27, %s2473_s24  ;;  %p2479_p9 = scmp.lt.s32.totalorder %s2473_s24, %s2473_s24 }
  0x50   :  { %p2480_p10 = por %p2479_p9, %p2478_p8 }
  0x52   :  { %p2481_p11 = pnand %p2480_p10, %p2474_p7 }
  0x54   :  { %2484 = shalt.err (!%p2481_p11)
}
  0x55   :  { %80 = dma.hbm_to_vmem [thread:$0]  %s2885_s5, 1024, %s75_s27, [#allocation11], %s2540_s15, %s2540_s15, %s2541_s16  }
  0x56   :  { %2529 = dma.done.wait [#allocation5], 256  }
  0x57   :  { %2530 = vsyncadd [#allocation5], 4294967040 }
  0x58   :  { %2531 = dma.done.wait [#allocation8], 2048  }
  0x59   :  { %2532 = vsyncadd [#allocation8], 4294965248 }
  0x5a   :  { %2533 = dma.done.wait [#allocation11], 2048  }
  0x5b   :  { %2534 = vsyncadd [#allocation11], 4294965248  ;;  %v2548_v0 = vmov 0.0   ;;  %vm2549_vm0 = vmmov 0   ;;  %v2191_v1 = vld [vmem:[#allocation9] sm:$0xff]   ;;  %v2193_v3 = vld [vmem:[#allocation9 + $0x8] sm:$0xff]  }
  0x5c   :  { %1986 = vmatprep.subr.bf16.mxu1 %v2548_v0  ;;  %2002 = vmatprep.mubr.msk.bf16.mxu1 %vm2549_vm0, %v2548_v0  ;;  %v2192_v2 = vld [vmem:[#allocation10] sm:$0xff]   ;;  %v2194_v4 = vld [vmem:[#allocation10 + $0x8] sm:$0xff]   ;;  %v2195_v5 = vld [vmem:[#allocation9 + $0x10] sm:$0xff]  }
  0x5d   :  { %1954 = vmatprep.subr.bf16.mxu0 %v2191_v1  ;;  %1987 = vmatpush3.bf16.msra.mxu1 %v2192_v2  ;;  %v2196_v6 = vld [vmem:[#allocation10 + $0x10] sm:$0xff]   ;;  %v2197_v7 = vld [vmem:[#allocation9 + $0x18] sm:$0xff]   ;;  %v2199_v9 = vld [vmem:[#allocation9 + $0x20] sm:$0xff]  }
  0x5e   :  { %1955 = vmatpush3.bf16.msra.mxu0 %v2191_v1  ;;  %1988 = vmatprep.subr.bf16.mxu1 %v2548_v0  ;;  %v2198_v8 = vld [vmem:[#allocation10 + $0x18] sm:$0xff]   ;;  %v2200_v10 = vld [vmem:[#allocation10 + $0x20] sm:$0xff]   ;;  %v2201_v11 = vld [vmem:[#allocation9 + $0x28] sm:$0xff]  }
  0x5f   :  { %1956 = vmatprep.subr.bf16.mxu0 %v2193_v3  ;;  %v2207_v12 = vld [vmem:[#allocation7] sm:$0xff]   ;;  %v2202_v13 = vld [vmem:[#allocation10 + $0x28] sm:$0xff]   ;;  %v2203_v14 = vld [vmem:[#allocation9 + $0x30] sm:$0xff]  }
  0x60   :  { %1970 = vmatprep.mubr.bf16.mxu0 %v2207_v12  ;;  %v2204_v15 = vld [vmem:[#allocation10 + $0x30] sm:$0xff]   ;;  %v2205_v16 = vld [vmem:[#allocation9 + $0x38] sm:$0xff]   ;;  %v2208_v20 = vld [vmem:[#allocation7 + $0x8] sm:$0xff]  }
  0x61   :  { %1989 = vmatpush3.bf16.msra.mxu1 %v2194_v4  ;;  %v2206_v17 = vld [vmem:[#allocation10 + $0x38] sm:$0xff]   ;;  %v103_v18 = vld [vmem:[#allocation4] sm:$0xff]  ;;  %v2209_v21 = vld [vmem:[#allocation10] sm:$0xff]  }
  0x62   :  { %1957 = vmatpush3.bf16.msra.mxu0 %v2193_v3  ;;  %1990 = vmatprep.subr.bf16.mxu1 %v2548_v0  ;;  %v104_v19 = vld [vmem:[#allocation4 + $0x8] sm:$0xff]  ;;  %v2210_v22 = vld [vmem:[#allocation7 + $0x10] sm:$0xff]   ;;  %v2211_v24 = vld [vmem:[#allocation10 + $0x8] sm:$0xff]  }
  0x63   :  { %1958 = vmatprep.subr.bf16.mxu0 %v2195_v5  ;;  %v359_v23 = vpack.c.bf16 %v104_v19, %v103_v18  ;;  %v2212_v25 = vld [vmem:[#allocation7 + $0x18] sm:$0xff]   ;;  %v2213_v26 = vld [vmem:[#allocation10 + $0x10] sm:$0xff]   ;;  %v2214_v27 = vld [vmem:[#allocation7 + $0x20] sm:$0xff]  }
  0x64   :  { %v2215_v28 = vld [vmem:[#allocation10 + $0x18] sm:$0xff]   ;;  %v2216_v29 = vld [vmem:[#allocation7 + $0x28] sm:$0xff]   ;;  %v2217_v30 = vld [vmem:[#allocation10 + $0x20] sm:$0xff]  }
  0x65   :  { %1991 = vmatpush3.bf16.msra.mxu1 %v2196_v6  ;;  %v2218_v31 = vld [vmem:[#allocation7 + $0x30] sm:$0xff]   ;;  %v2219_v32 = vld [vmem:[#allocation10 + $0x28] sm:$0xff]   ;;  %v2220_v33 = vld [vmem:[#allocation7 + $0x38] sm:$0xff]  }
  0x66   :  { %1959 = vmatpush3.bf16.msra.mxu0 %v2195_v5  ;;  %1992 = vmatprep.subr.bf16.mxu1 %v2548_v0  ;;  %v2221_v34 = vld [vmem:[#allocation10 + $0x30] sm:$0xff]   ;;  %v2222_v35 = vld [vmem:[#allocation10 + $0x38] sm:$0xff]   ;;  %v2223_v36 = vld [vmem:[#allocation10] sm:$0xff]  }
  0x67   :  { %1960 = vmatprep.subr.bf16.mxu0 %v2197_v7  ;;  %v2224_v37 = vld [vmem:[#allocation10 + $0x8] sm:$0xff]   ;;  %v2225_v38 = vld [vmem:[#allocation10 + $0x10] sm:$0xff]   ;;  %v2226_v39 = vld [vmem:[#allocation10 + $0x18] sm:$0xff]  }
  0x68   :  { %v2703_v40 = vld [vmem:[%s2884_s4] ss:$0 sm:$0xff]  ;;  %v2227_v5 = vld [vmem:[#allocation10 + $0x20] sm:$0xff]   ;;  %v2228_v6 = vld [vmem:[#allocation10 + $0x28] sm:$0xff]  }
  0x69   :  { %1993 = vmatpush3.bf16.msra.mxu1 %v2198_v8  ;;  %v2230_v8 = vld [vmem:[#allocation10 + $0x38] sm:$0xff]  }
  0x6a   :  { %1961 = vmatpush3.bf16.msra.mxu0 %v2197_v7  ;;  %1994 = vmatprep.subr.bf16.mxu1 %v2548_v0  ;;  %v2229_v7 = vld [vmem:[#allocation10 + $0x30] sm:$0xff]   ;;  %v2234_v12 = vld [vmem:[#allocation10 + $0x18] sm:$0xff]  }
  0x6b   :  { %1962 = vmatprep.subr.bf16.mxu0 %v2199_v9 }
  0x6d   :  { %1995 = vmatpush3.bf16.msra.mxu1 %v2200_v10  ;;  %v2232_v10 = vld [vmem:[#allocation10 + $0x8] sm:$0xff]  }
  0x6e   :  { %1963 = vmatpush3.bf16.msra.mxu0 %v2199_v9  ;;  %1996 = vmatprep.subr.bf16.mxu1 %v2548_v0  ;;  %v2231_v9 = vld [vmem:[#allocation10] sm:$0xff]  }
  0x6f   :  { %1964 = vmatprep.subr.bf16.mxu0 %v2201_v11 }
  0x71   :  { %1997 = vmatpush3.bf16.msra.mxu1 %v2202_v13 }
  0x72   :  { %1965 = vmatpush3.bf16.msra.mxu0 %v2201_v11  ;;  %1998 = vmatprep.subr.bf16.mxu1 %v2548_v0  ;;  %v2233_v11 = vld [vmem:[#allocation10 + $0x10] sm:$0xff]  }
  0x73   :  { %1966 = vmatprep.subr.bf16.mxu0 %v2203_v14 }
  0x75   :  { %1999 = vmatpush3.bf16.msra.mxu1 %v2204_v15 }
  0x76   :  { %1967 = vmatpush3.bf16.msra.mxu0 %v2203_v14  ;;  %2000 = vmatprep.subr.bf16.mxu1 %v2548_v0 }
  0x77   :  { %1968 = vmatprep.subr.bf16.mxu0 %v2205_v16 }
  0x79   :  { %2001 = vmatpush3.bf16.msra.mxu1 %v2206_v17 }
  0x7a   :  { %1969 = vmatpush3.bf16.msra.mxu0 %v2205_v16  ;;  %2026 = vmatprep.subr.bf16.mxu1 %v2548_v0 }
  0x7b   :  { %2006 = vmatprep.subr.bf16.mxu0 %v2548_v0 }
  0x7c   :  { %2003 = vmatmul.mubr.bf16.vlgmr.msra.gmra.mrb[0].mxu1 %v359_v23 }
  0x7d   :  { %1971 = vmatmul.mubr.bf16.vlgmr.msra.gmra.mrb[0].mxu0 %v2208_v20  ;;  %2042 = vmatprep.mubr.msk.bf16.mxu1 %vm2549_vm0, %v2548_v0 }
  0x7e   :  { %2007 = vmatpush3.bf16.msra.mxu0 %v2209_v21  ;;  %1974 = vmatprep.mubr.bf16.mxu0 %v2210_v22 }
  0x7f   :  { %2008 = vmatprep.subr.bf16.mxu0 %v2548_v0  ;;  %2027 = vmatpush3.bf16.msra.mxu1 %v2223_v36 }
  0x80   :  { %2028 = vmatprep.subr.bf16.mxu1 %v2548_v0 }
  0x82   :  { %2009 = vmatpush3.bf16.msra.mxu0 %v2211_v24  ;;  %v2235_v24 = vld [vmem:[#allocation10 + $0x20] sm:$0xff]  }
  0x83   :  { %2010 = vmatprep.subr.bf16.mxu0 %v2548_v0  ;;  %2029 = vmatpush3.bf16.msra.mxu1 %v2224_v37 }
  0x84   :  { %2030 = vmatprep.subr.bf16.mxu1 %v2548_v0 }
  0x85   :  { %1975 = vmatmul.mubr.bf16.gmra.mrb[4].mxu0 %v2212_v25  ;;  %v2236_v25 = vld [vmem:[#allocation10 + $0x28] sm:$0xff]  }
  0x86   :  { %2011 = vmatpush3.bf16.msra.mxu0 %v2213_v26  ;;  %1978 = vmatprep.mubr.bf16.mxu0 %v2214_v27  ;;  %v2237_v26 = vld [vmem:[#allocation10 + $0x30] sm:$0xff]   ;;  %v2238_v27 = vld [vmem:[#allocation10 + $0x38] sm:$0xff]  }
  0x87   :  { %2012 = vmatprep.subr.bf16.mxu0 %v2548_v0  ;;  %2031 = vmatpush3.bf16.msra.mxu1 %v2225_v38 }
  0x88   :  { %2032 = vmatprep.subr.bf16.mxu1 %v2548_v0 }
  0x8a   :  { %2013 = vmatpush3.bf16.msra.mxu0 %v2215_v28  ;;  %v2239_v28 = vld [vmem:[#allocation10] sm:$0xff]  }
  0x8b   :  { %2014 = vmatprep.subr.bf16.mxu0 %v2548_v0  ;;  %2033 = vmatpush3.bf16.msra.mxu1 %v2226_v39 }
  0x8c   :  { %2034 = vmatprep.subr.bf16.mxu1 %v2548_v0 }
  0x8d   :  { %1979 = vmatmul.mubr.bf16.gmra.mrb[8].mxu0 %v2216_v29  ;;  %v2240_v29 = vld [vmem:[#allocation10 + $0x8] sm:$0xff]  }
  0x8e   :  { %2015 = vmatpush3.bf16.msra.mxu0 %v2217_v30  ;;  %1982 = vmatprep.mubr.bf16.mxu0 %v2218_v31  ;;  %v2241_v30 = vld [vmem:[#allocation10 + $0x10] sm:$0xff]   ;;  %v2242_v31 = vld [vmem:[#allocation10 + $0x18] sm:$0xff]  }
  0x8f   :  { %2016 = vmatprep.subr.bf16.mxu0 %v2548_v0  ;;  %2035 = vmatpush3.bf16.msra.mxu1 %v2227_v5 }
  0x90   :  { %2036 = vmatprep.subr.bf16.mxu1 %v2548_v0 }
  0x92   :  { %2017 = vmatpush3.bf16.msra.mxu0 %v2219_v32 }
  0x93   :  { %2018 = vmatprep.subr.bf16.mxu0 %v2548_v0  ;;  %2037 = vmatpush3.bf16.msra.mxu1 %v2228_v6 }
  0x94   :  { %2038 = vmatprep.subr.bf16.mxu1 %v2548_v0 }
  0x95   :  { %1983 = vmatmul.mubr.bf16.gmra.mrb[12].mxu0 %v2220_v33 }
  0x96   :  { %2022 = vmatprep.mubr.msk.bf16.mxu0 %vm2549_vm0, %v2548_v0  ;;  %2019 = vmatpush3.bf16.msra.mxu0 %v2221_v34 }
  0x97   :  { %2020 = vmatprep.subr.bf16.mxu0 %v2548_v0  ;;  %2039 = vmatpush3.bf16.msra.mxu1 %v2229_v7 }
  0x98   :  { %2040 = vmatprep.subr.bf16.mxu1 %v2548_v0 }
  0x9a   :  { %2021 = vmatpush3.bf16.msra.mxu0 %v2222_v35 }
  0x9b   :  { %2046 = vmatprep.subr.bf16.mxu0 %v2548_v0  ;;  %2041 = vmatpush3.bf16.msra.mxu1 %v2230_v8 }
  0x9c   :  { %2066 = vmatprep.subr.bf16.mxu1 %v2548_v0 }
 0x14f   :  { %v458_v42 = vpop.f32.mrb[0].mxu1 }
 0x150   :  { %v1972_v41 = vpop.f32.mrb[0].mxu0  ;;  %v2004_v44 = vpop.f32.mrb[1].mxu1 }
 0x151   :  { %v276_v43 = vpop.f32.mrb[1].mxu0  ;;  %v461_v47 = vpop.f32.mrb[2].mxu1  ;;  %v285_v13 = vadd.f32 %v1972_v41, %v2703_v40  ;;  %v2243_v44 = vld [vmem:[#allocation10 + $0x20] sm:$0xff]  }
 0x152   :  { %v277_v45 = vadd.f32 %v2703_v40, %v276_v43  ;;  %v1973_v46 = vpop.f32.mrb[2].mxu0  ;;  %v2005_v49 = vpop.f32.mrb[3].mxu1 }
 0x153   :  { %v279_v48 = vpop.f32.mrb[3].mxu0  ;;  %v288_v15 = vadd.f32 %v1973_v46, %v2703_v40  ;;  %v2245_v46 = vld [vmem:[#allocation10 + $0x30] sm:$0xff]   ;;  %v2248_v49 = vld [vmem:[#allocation10 + $0x8] sm:$0xff]  }
 0x154   :  { %v465_v50 = vadd.f32 %v458_v42, %v277_v45  ;;  %v280_v51 = vadd.f32 %v2703_v40, %v279_v48  ;;  %v2244_v45 = vld [vmem:[#allocation10 + $0x28] sm:$0xff]   ;;  %v2247_v48 = vld [vmem:[#allocation10] sm:$0xff]  }
 0x156   :  { %v466_v52 = vadd.f32 %v461_v47, %v280_v51  ;;  %2279 = vtanh.f32 %v465_v50  ;;  %v2246_v47 = vld [vmem:[#allocation10 + $0x38] sm:$0xff]   ;;  %v2249_v50 = vld [vmem:[#allocation10 + $0x10] sm:$0xff]  }
 0x157   :  { %v2250_v51 = vld [vmem:[#allocation10 + $0x18] sm:$0xff]  }
 0x158   :  { %2281 = vtanh.f32 %v466_v52  ;;  %v2707_v53 = vpop.f32.mrb[4].mxu0 }
 0x159   :  { %v2709_v54 = vpop.f32.mrb[5].mxu0  ;;  %v301_v52 = vadd.f32 %v2707_v53, %v2703_v40  ;;  %v2251_v53 = vld [vmem:[#allocation10 + $0x20] sm:$0xff]  }
 0x15a   :  { %v2711_v55 = vpop.f32.mrb[6].mxu0  ;;  %v293_v32 = vadd.f32 %v2703_v40, %v2709_v54 }
 0x15b   :  { %v2713_v56 = vpop.f32.mrb[7].mxu0 }
 0x15c   :  { %v296_v34 = vadd.f32 %v2703_v40, %v2713_v56  ;;  %v304_v56 = vadd.f32 %v2711_v55, %v2703_v40  ;;  %v2252_v55 = vld [vmem:[#allocation10 + $0x28] sm:$0xff]  }
 0x160   :  { %v2280_v57 = vpop.eup %2279  ;;  %v2720_v60 = vpop.f32.mrb[8].mxu0 }
 0x161   :  { %v2722_v61 = vpop.f32.mrb[9].mxu0 }
 0x162   :  { %v2282_v58 = vpop.eup %2281  ;;  %v2724_v62 = vpop.f32.mrb[10].mxu0 }
 0x163   :  { %v2715_v59 = vpack.c.bf16 %v2282_v58, %v2280_v57  ;;  %v2726_v63 = vpop.f32.mrb[11].mxu0 }
 0x165   :  { %2023 = vmatmul.mubr.bf16.vlgmr.msra.gmra.mrb[16].mxu0 %v2715_v59 }
 0x166   :  { %2062 = vmatprep.mubr.msk.bf16.mxu0 %vm2549_vm0, %v2548_v0  ;;  %2047 = vmatpush3.bf16.msra.mxu0 %v2231_v9 }
 0x167   :  { %2048 = vmatprep.subr.bf16.mxu0 %v2548_v0 }
 0x168   :  { %v2728_v1 = vpop.f32.mrb[12].mxu0 }
 0x169   :  { %v2730_v2 = vpop.f32.mrb[13].mxu0 }
 0x16a   :  { %v2732_v3 = vpop.f32.mrb[14].mxu0  ;;  %2049 = vmatpush3.bf16.msra.mxu0 %v2232_v10 }
 0x16b   :  { %v2734_v4 = vpop.f32.mrb[15].mxu0  ;;  %2050 = vmatprep.subr.bf16.mxu0 %v2548_v0 }
 0x16e   :  { %2051 = vmatpush3.bf16.msra.mxu0 %v2233_v11  ;;  %v2253_v11 = vld [vmem:[#allocation10 + $0x30] sm:$0xff]  }
 0x16f   :  { %2052 = vmatprep.subr.bf16.mxu0 %v2548_v0 }
 0x172   :  { %2053 = vmatpush3.bf16.msra.mxu0 %v2234_v12  ;;  %v2254_v12 = vld [vmem:[#allocation10 + $0x38] sm:$0xff]  }
 0x173   :  { %2054 = vmatprep.subr.bf16.mxu0 %v2548_v0 }
 0x176   :  { %2055 = vmatpush3.bf16.msra.mxu0 %v2235_v24 }
 0x177   :  { %2056 = vmatprep.subr.bf16.mxu0 %v2548_v0 }
 0x17a   :  { %2057 = vmatpush3.bf16.msra.mxu0 %v2236_v25 }
 0x17b   :  { %2058 = vmatprep.subr.bf16.mxu0 %v2548_v0 }
 0x17e   :  { %2059 = vmatpush3.bf16.msra.mxu0 %v2237_v26 }
 0x17f   :  { %2060 = vmatprep.subr.bf16.mxu0 %v2548_v0 }
 0x182   :  { %2061 = vmatpush3.bf16.msra.mxu0 %v2238_v27 }
 0x183   :  { %2086 = vmatprep.subr.bf16.mxu0 %v2548_v0 }
 0x238   :  { %v572_v14 = vpop.f32.mrb[16].mxu0 }
 0x239   :  { %v579_v16 = vadd.f32 %v572_v14, %v285_v13  ;;  %v2024_v17 = vpop.f32.mrb[17].mxu0  ;;  %v2255_v13 = vld [vmem:[#allocation10] sm:$0xff]   ;;  %v2256_v14 = vld [vmem:[#allocation10 + $0x8] sm:$0xff]  }
 0x23a   :  { %v575_v18 = vpop.f32.mrb[18].mxu0  ;;  %v309_v17 = vadd.f32 %v2703_v40, %v2722_v61  ;;  %v2259_v61 = vld [vmem:[#allocation10 + $0x20] sm:$0xff]  }
 0x23b   :  { %v580_v19 = vadd.f32 %v575_v18, %v288_v15  ;;  %v2025_v20 = vpop.f32.mrb[19].mxu0  ;;  %2283 = vtanh.f32 %v579_v16  ;;  %v2257_v15 = vld [vmem:[#allocation10 + $0x10] sm:$0xff]   ;;  %v2258_v16 = vld [vmem:[#allocation10 + $0x18] sm:$0xff]  }
 0x23d   :  { %2285 = vtanh.f32 %v580_v19  ;;  %v312_v19 = vadd.f32 %v2703_v40, %v2726_v63  ;;  %v2260_v63 = vld [vmem:[#allocation10 + $0x28] sm:$0xff]  }
 0x245   :  { %v2284_v21 = vpop.eup %2283 }
 0x247   :  { %v2286_v22 = vpop.eup %2285 }
 0x248   :  { %v2746_v23 = vpack.c.bf16 %v2286_v22, %v2284_v21 }
 0x24a   :  { %2043 = vmatmul.mubr.bf16.vlgmr.msra.gmra.mrb[4].mxu1 %v2746_v23 }
 0x24b   :  { %2082 = vmatprep.mubr.msk.bf16.mxu1 %vm2549_vm0, %v2548_v0  ;;  %2067 = vmatpush3.bf16.msra.mxu1 %v2239_v28 }
 0x24c   :  { %2068 = vmatprep.subr.bf16.mxu1 %v2548_v0 }
 0x24f   :  { %2069 = vmatpush3.bf16.msra.mxu1 %v2240_v29  ;;  %v2261_v29 = vld [vmem:[#allocation10 + $0x30] sm:$0xff]  }
 0x250   :  { %2070 = vmatprep.subr.bf16.mxu1 %v2548_v0 }
 0x253   :  { %2071 = vmatpush3.bf16.msra.mxu1 %v2241_v30  ;;  %v2262_v30 = vld [vmem:[#allocation10 + $0x38] sm:$0xff]  }
 0x254   :  { %2072 = vmatprep.subr.bf16.mxu1 %v2548_v0 }
 0x257   :  { %2073 = vmatpush3.bf16.msra.mxu1 %v2242_v31  ;;  %v2263_v31 = vld [vmem:[#allocation12] sm:$0xff]  }
 0x258   :  { %2074 = vmatprep.subr.bf16.mxu1 %v2548_v0 }
 0x25b   :  { %2075 = vmatpush3.bf16.msra.mxu1 %v2243_v44 }
 0x25c   :  { %2076 = vmatprep.subr.bf16.mxu1 %v2548_v0 }
 0x25f   :  { %2077 = vmatpush3.bf16.msra.mxu1 %v2244_v45 }
 0x260   :  { %2078 = vmatprep.subr.bf16.mxu1 %v2548_v0 }
 0x263   :  { %2079 = vmatpush3.bf16.msra.mxu1 %v2245_v46 }
 0x264   :  { %2080 = vmatprep.subr.bf16.mxu1 %v2548_v0 }
 0x267   :  { %2081 = vmatpush3.bf16.msra.mxu1 %v2246_v47 }
 0x268   :  { %2106 = vmatprep.subr.bf16.mxu1 %v2548_v0 }
 0x31d   :  { %v687_v33 = vpop.f32.mrb[4].mxu1 }
 0x31e   :  { %v694_v35 = vadd.f32 %v687_v33, %v293_v32  ;;  %v2044_v36 = vpop.f32.mrb[5].mxu1  ;;  %v2271_v32 = vld [vmem:[#allocation10] sm:$0xff]   ;;  %v2272_v33 = vld [vmem:[#allocation10 + $0x8] sm:$0xff]  }
 0x31f   :  { %v690_v37 = vpop.f32.mrb[6].mxu1  ;;  %v317_v36 = vadd.f32 %v2720_v60, %v2703_v40  ;;  %v2265_v60 = vld [vmem:[#allocation12 + $0x10] sm:$0xff]  }
 0x320   :  { %v695_v38 = vadd.f32 %v690_v37, %v296_v34  ;;  %v2045_v39 = vpop.f32.mrb[7].mxu1  ;;  %2287 = vtanh.f32 %v694_v35  ;;  %v2273_v34 = vld [vmem:[#allocation10 + $0x10] sm:$0xff]   ;;  %v2274_v35 = vld [vmem:[#allocation10 + $0x18] sm:$0xff]  }
 0x322   :  { %2289 = vtanh.f32 %v695_v38  ;;  %v320_v38 = vadd.f32 %v2724_v62, %v2703_v40  ;;  %v2266_v62 = vld [vmem:[#allocation12 + $0x18] sm:$0xff]  }
 0x32a   :  { %v2288_v41 = vpop.eup %2287 }
 0x32c   :  { %v2290_v42 = vpop.eup %2289 }
 0x32d   :  { %v2763_v43 = vpack.c.bf16 %v2290_v42, %v2288_v41 }
 0x32f   :  { %2063 = vmatmul.mubr.bf16.vlgmr.msra.gmra.mrb[20].mxu0 %v2763_v43 }
 0x330   :  { %2102 = vmatprep.mubr.msk.bf16.mxu0 %vm2549_vm0, %v2548_v0  ;;  %2087 = vmatpush3.bf16.msra.mxu0 %v2247_v48 }
 0x331   :  { %2088 = vmatprep.subr.bf16.mxu0 %v2548_v0 }
 0x334   :  { %2089 = vmatpush3.bf16.msra.mxu0 %v2248_v49  ;;  %v2264_v49 = vld [vmem:[#allocation12 + $0x8] sm:$0xff]  }
 0x335   :  { %2090 = vmatprep.subr.bf16.mxu0 %v2548_v0 }
 0x338   :  { %2091 = vmatpush3.bf16.msra.mxu0 %v2249_v50  ;;  %v2267_v50 = vld [vmem:[#allocation12 + $0x20] sm:$0xff]  }
 0x339   :  { %2092 = vmatprep.subr.bf16.mxu0 %v2548_v0 }
 0x33c   :  { %2093 = vmatpush3.bf16.msra.mxu0 %v2250_v51  ;;  %v2268_v51 = vld [vmem:[#allocation12 + $0x28] sm:$0xff]  }
 0x33d   :  { %2094 = vmatprep.subr.bf16.mxu0 %v2548_v0 }
 0x340   :  { %2095 = vmatpush3.bf16.msra.mxu0 %v2251_v53 }
 0x341   :  { %2096 = vmatprep.subr.bf16.mxu0 %v2548_v0 }
 0x344   :  { %2097 = vmatpush3.bf16.msra.mxu0 %v2252_v55 }
 0x345   :  { %2098 = vmatprep.subr.bf16.mxu0 %v2548_v0 }
 0x348   :  { %2099 = vmatpush3.bf16.msra.mxu0 %v2253_v11 }
 0x349   :  { %2100 = vmatprep.subr.bf16.mxu0 %v2548_v0 }
 0x34c   :  { %2101 = vmatpush3.bf16.msra.mxu0 %v2254_v12 }
 0x34d   :  { %2126 = vmatprep.subr.bf16.mxu0 %v2548_v0 }
 0x402   :  { %v802_v54 = vpop.f32.mrb[20].mxu0 }
 0x403   :  { %v809_v57 = vadd.f32 %v802_v54, %v301_v52  ;;  %v2064_v58 = vpop.f32.mrb[21].mxu0  ;;  %v2269_v52 = vld [vmem:[#allocation12 + $0x30] sm:$0xff]   ;;  %v2270_v54 = vld [vmem:[#allocation12 + $0x38] sm:$0xff]  }
 0x404   :  { %v805_v5 = vpop.f32.mrb[22].mxu0  ;;  %v2278_v58 = vld [vmem:[#allocation10 + $0x38] sm:$0xff]  }
 0x405   :  { %v810_v6 = vadd.f32 %v805_v5, %v304_v56  ;;  %v2065_v7 = vpop.f32.mrb[23].mxu0  ;;  %2291 = vtanh.f32 %v809_v57  ;;  %v2276_v56 = vld [vmem:[#allocation10 + $0x28] sm:$0xff]   ;;  %v2277_v57 = vld [vmem:[#allocation10 + $0x30] sm:$0xff]   ;;  %v328_v5 = vadd.f32 %v2703_v40, %v2734_v4 }
 0x407   :  { %2293 = vtanh.f32 %v810_v6 }
 0x40f   :  { %v2292_v8 = vpop.eup %2291 }
 0x411   :  { %v2294_v9 = vpop.eup %2293 }
 0x412   :  { %v2780_v10 = vpack.c.bf16 %v2294_v9, %v2292_v8 }
 0x414   :  { %2083 = vmatmul.mubr.bf16.vlgmr.msra.gmra.mrb[8].mxu1 %v2780_v10 }
 0x415   :  { %2122 = vmatprep.mubr.msk.bf16.mxu1 %vm2549_vm0, %v2548_v0  ;;  %2107 = vmatpush3.bf16.msra.mxu1 %v2255_v13 }
 0x416   :  { %2108 = vmatprep.subr.bf16.mxu1 %v2548_v0 }
 0x419   :  { %2109 = vmatpush3.bf16.msra.mxu1 %v2256_v14 }
 0x41a   :  { %2110 = vmatprep.subr.bf16.mxu1 %v2548_v0 }
 0x41d   :  { %2111 = vmatpush3.bf16.msra.mxu1 %v2257_v15 }
 0x41e   :  { %2112 = vmatprep.subr.bf16.mxu1 %v2548_v0 }
 0x421   :  { %2113 = vmatpush3.bf16.msra.mxu1 %v2258_v16 }
 0x422   :  { %2114 = vmatprep.subr.bf16.mxu1 %v2548_v0 }
 0x425   :  { %2115 = vmatpush3.bf16.msra.mxu1 %v2259_v61 }
 0x426   :  { %2116 = vmatprep.subr.bf16.mxu1 %v2548_v0 }
 0x429   :  { %2117 = vmatpush3.bf16.msra.mxu1 %v2260_v63 }
 0x42a   :  { %2118 = vmatprep.subr.bf16.mxu1 %v2548_v0 }
 0x42d   :  { %2119 = vmatpush3.bf16.msra.mxu1 %v2261_v29 }
 0x42e   :  { %2120 = vmatprep.subr.bf16.mxu1 %v2548_v0 }
 0x431   :  { %2121 = vmatpush3.bf16.msra.mxu1 %v2262_v30 }
 0x432   :  { %2146 = vmatprep.subr.bf16.mxu1 %v2263_v31 }
 0x4e7   :  { %v917_v18 = vpop.f32.mrb[8].mxu1 }
 0x4e8   :  { %v924_v20 = vadd.f32 %v917_v18, %v309_v17  ;;  %v2084_v21 = vpop.f32.mrb[9].mxu1 }
 0x4e9   :  { %v920_v22 = vpop.f32.mrb[10].mxu1 }
 0x4ea   :  { %v925_v24 = vadd.f32 %v920_v22, %v312_v19  ;;  %v2085_v25 = vpop.f32.mrb[11].mxu1  ;;  %2295 = vtanh.f32 %v924_v20 }
 0x4ec   :  { %2297 = vtanh.f32 %v925_v24 }
 0x4f4   :  { %v2296_v26 = vpop.eup %2295 }
 0x4f6   :  { %v2298_v27 = vpop.eup %2297 }
 0x4f7   :  { %v2797_v28 = vpack.c.bf16 %v2298_v27, %v2296_v26 }
 0x4f9   :  { %2103 = vmatmul.mubr.bf16.vlgmr.msra.gmra.mrb[24].mxu0 %v2797_v28 }
 0x4fa   :  { %2142 = vmatprep.mubr.msk.bf16.mxu0 %vm2549_vm0, %v2548_v0  ;;  %2127 = vmatpush3.bf16.msra.mxu0 %v2271_v32 }
 0x4fb   :  { %2128 = vmatprep.subr.bf16.mxu0 %v2548_v0 }
 0x4fe   :  { %2129 = vmatpush3.bf16.msra.mxu0 %v2272_v33 }
 0x4ff   :  { %2130 = vmatprep.subr.bf16.mxu0 %v2548_v0 }
 0x502   :  { %2131 = vmatpush3.bf16.msra.mxu0 %v2273_v34 }
 0x503   :  { %2132 = vmatprep.subr.bf16.mxu0 %v2548_v0 }
 0x506   :  { %2133 = vmatpush3.bf16.msra.mxu0 %v2274_v35 }
 0x507   :  { %2134 = vmatprep.subr.bf16.mxu0 %v2548_v0 }
 0x5cc   :  { %v1032_v37 = vpop.f32.mrb[24].mxu0 }
 0x5cd   :  { %v1039_v39 = vadd.f32 %v1032_v37, %v317_v36  ;;  %v2104_v41 = vpop.f32.mrb[25].mxu0 }
 0x5ce   :  { %v1035_v42 = vpop.f32.mrb[26].mxu0 }
 0x5cf   :  { %v1040_v44 = vadd.f32 %v1035_v42, %v320_v38  ;;  %v2105_v45 = vpop.f32.mrb[27].mxu0  ;;  %2299 = vtanh.f32 %v1039_v39 }
 0x5d1   :  { %2301 = vtanh.f32 %v1040_v44 }
 0x5d9   :  { %v2300_v46 = vpop.eup %2299 }
 0x5db   :  { %v2302_v47 = vpop.eup %2301 }
 0x5dc   :  { %v1043_v48 = vpack.c.bf16 %v2302_v47, %v2300_v46 }
 0x5de   :  { %2123 = vmatmul.mubr.bf16.vlgmr.msra.gmra.mrb[12].mxu1 %v1043_v48 }
 0x5df   :  { %2147 = vmatpush3.bf16.msra.mxu1 %v2263_v31  ;;  %2162 = vmatprep.mubr.bf16.mxu1 %v2715_v59  ;;  %v2275_v59 = vld [vmem:[#allocation10 + $0x20] sm:$0xff]  }
 0x5e0   :  { %2148 = vmatprep.subr.bf16.mxu1 %v2264_v49  ;;  %2135 = vmatpush3.bf16.msra.mxu0 %v2275_v59 }
 0x5e1   :  { %2136 = vmatprep.subr.bf16.mxu0 %v2548_v0 }
 0x5e3   :  { %2149 = vmatpush3.bf16.msra.mxu1 %v2264_v49 }
 0x5e4   :  { %2150 = vmatprep.subr.bf16.mxu1 %v2265_v60  ;;  %2137 = vmatpush3.bf16.msra.mxu0 %v2276_v56 }
 0x5e5   :  { %2138 = vmatprep.subr.bf16.mxu0 %v2548_v0 }
 0x5e7   :  { %2151 = vmatpush3.bf16.msra.mxu1 %v2265_v60 }
 0x5e8   :  { %2152 = vmatprep.subr.bf16.mxu1 %v2266_v62  ;;  %2139 = vmatpush3.bf16.msra.mxu0 %v2277_v57 }
 0x5e9   :  { %2140 = vmatprep.subr.bf16.mxu0 %v2548_v0  ;;  %v2828_v0 = vld [vmem:[%s2886_s6] ss:$0 sm:$0xff]  ;;  %s2550_s6 = smov [#allocation14]  }
 0x5ea   :  { %s1647_s29 = sshll.u32 %s2550_s6, 4  ;;  %s1648_s29 = int_to_ptr.vmem [resolvable:$true] %s1647_s29 }
 0x5eb   :  { %2153 = vmatpush3.bf16.msra.mxu1 %v2266_v62  ;;  %s2485_s30 = scalar_lea.vmem %s1648_s29, 256  ;;  %p2490_p13 = scmp.lt.s32.totalorder %s1648_s29, %s1648_s29 }
 0x5ec   :  { %2154 = vmatprep.subr.bf16.mxu1 %v2267_v50  ;;  %2141 = vmatpush3.bf16.msra.mxu0 %v2278_v58  ;;  %p2486_p12 = scmp.ne.s32.totalorder %s1648_s29, %s2485_s30  ;;  %p2491_p0 = scmp.lt.s32.totalorder %s2485_s30, %s2485_s30 }
 0x5ee   :  { %p2492_p1 = por %p2491_p0, %p2490_p13 }
 0x5ef   :  { %2155 = vmatpush3.bf16.msra.mxu1 %v2267_v50 }
 0x5f0   :  { %2156 = vmatprep.subr.bf16.mxu1 %v2268_v51  ;;  %p2493_p2 = pnand %p2492_p1, %p2486_p12 }
 0x5f3   :  { %2157 = vmatpush3.bf16.msra.mxu1 %v2268_v51 }
 0x5f4   :  { %2158 = vmatprep.subr.bf16.mxu1 %v2269_v52 }
 0x5f7   :  { %2159 = vmatpush3.bf16.msra.mxu1 %v2269_v52 }
 0x5f8   :  { %2160 = vmatprep.subr.bf16.mxu1 %v2270_v54 }
 0x5fb   :  { %2161 = vmatpush3.bf16.msra.mxu1 %v2270_v54 }
 0x5fe   :  { %2163 = vmatmul.mubr.bf16.vlgmr.msra.gmra.mrb[16].mxu1 %v2746_v23  ;;  %v325_v23 = vadd.f32 %v2703_v40, %v2730_v2 }
 0x5ff   :  { %2166 = vmatprep.mubr.bf16.mxu1 %v2763_v43 }
 0x606   :  { %2167 = vmatmul.mubr.bf16.gmra.mrb[20].mxu1 %v2780_v10 }
 0x607   :  { %2170 = vmatprep.mubr.bf16.mxu1 %v2797_v28 }
 0x60e   :  { %2171 = vmatmul.mubr.bf16.gmra.mrb[24].mxu1 %v1043_v48 }
 0x6b1   :  { %v1147_v43 = vpop.f32.mrb[12].mxu1 }
 0x6b2   :  { %v1154_v6 = vadd.f32 %v1147_v43, %v325_v23  ;;  %v2124_v7 = vpop.f32.mrb[13].mxu1 }
 0x6b3   :  { %v1150_v8 = vpop.f32.mrb[14].mxu1 }
 0x6b4   :  { %v1155_v9 = vadd.f32 %v1150_v8, %v328_v5  ;;  %v2125_v10 = vpop.f32.mrb[15].mxu1  ;;  %2303 = vtanh.f32 %v1154_v6 }
 0x6b6   :  { %2305 = vtanh.f32 %v1155_v9 }
 0x6be   :  { %v2304_v53 = vpop.eup %2303 }
 0x6c0   :  { %v2306_v55 = vpop.eup %2305 }
 0x6c1   :  { %v1158_v11 = vpack.c.bf16 %v2306_v55, %v2304_v53 }
 0x6c3   :  { %2143 = vmatmul.mubr.bf16.vlgmr.msra.gmra.mrb[28].mxu0 %v1158_v11  ;;  %2174 = vmatprep.mubr.bf16.mxu1 %v1158_v11 }
 0x6d1   :  { %v2164_v2 = vpop.f32.mrb[16].mxu1 }
 0x6d2   :  { %v1400_v4 = vadd.f32 %v2164_v2, %v2828_v0  ;;  %v1391_v12 = vpop.f32.mrb[17].mxu1 }
 0x6d3   :  { %v1392_v13 = vadd.f32 %v2828_v0, %v1391_v12  ;;  %v2165_v14 = vpop.f32.mrb[18].mxu1 }
 0x6d4   :  { %v1757_v15 = vmul.f32 -1.442695, %v1400_v4  ;;  %v1403_v16 = vadd.f32 %v2165_v14, %v2828_v0  ;;  %v1394_v17 = vpop.f32.mrb[19].mxu1 }
 0x6d5   :  { %v1755_v18 = vmul.f32 -1.442695, %v1392_v13  ;;  %v1395_v19 = vadd.f32 %v2828_v0, %v1394_v17 }
 0x6d6   :  { %2307 = vpow2.f32 %v1757_v15  ;;  %v1758_v20 = vmul.f32 -1.442695, %v1403_v16 }
 0x6d7   :  { %2309 = vpow2.f32 %v1755_v18  ;;  %v1756_v21 = vmul.f32 -1.442695, %v1395_v19 }
 0x6d8   :  { %2311 = vpow2.f32 %v1758_v20 }
 0x6d9   :  { %2313 = vpow2.f32 %v1756_v21  ;;  %v2168_v22 = vpop.f32.mrb[20].mxu1 }
 0x6da   :  { %v1416_v24 = vadd.f32 %v2168_v22, %v2828_v0  ;;  %v1407_v25 = vpop.f32.mrb[21].mxu1 }
 0x6db   :  { %v1408_v26 = vadd.f32 %v2828_v0, %v1407_v25  ;;  %v2169_v27 = vpop.f32.mrb[22].mxu1 }
 0x6dc   :  { %v1761_v28 = vmul.f32 -1.442695, %v1416_v24  ;;  %v1419_v61 = vadd.f32 %v2169_v27, %v2828_v0  ;;  %v1410_v63 = vpop.f32.mrb[23].mxu1 }
 0x6dd   :  { %v1759_v29 = vmul.f32 -1.442695, %v1408_v26  ;;  %v1411_v30 = vadd.f32 %v2828_v0, %v1410_v63 }
 0x6de   :  { %2315 = vpow2.f32 %v1761_v28  ;;  %v1762_v31 = vmul.f32 -1.442695, %v1419_v61  ;;  %v333_v61 = vadd.f32 %v2728_v1, %v2703_v40 }
 0x6df   :  { %2317 = vpow2.f32 %v1759_v29  ;;  %v1760_v32 = vmul.f32 -1.442695, %v1411_v30  ;;  %v336_v29 = vadd.f32 %v2732_v3, %v2703_v40 }
 0x6e0   :  { %v2308_v33 = vpop.eup %2307  ;;  %2319 = vpow2.f32 %v1762_v31 }
 0x6e1   :  { %v2310_v34 = vpop.eup %2309  ;;  %v1504_v35 = vadd.f32 1.0, %v2308_v33  ;;  %2321 = vpow2.f32 %v1760_v32  ;;  %v2172_v36 = vpop.f32.mrb[24].mxu1 }
 0x6e2   :  { %v2312_v37 = vpop.eup %2311  ;;  %v1502_v38 = vadd.f32 1.0, %v2310_v34  ;;  %v1432_v39 = vadd.f32 %v2172_v36, %v2828_v0  ;;  %v1423_v41 = vpop.f32.mrb[25].mxu1 }
 0x6e3   :  { %v2314_v42 = vpop.eup %2313  ;;  %2323 = vrcp.f32 %v1504_v35  ;;  %v1505_v44 = vadd.f32 1.0, %v2312_v37  ;;  %v1424_v45 = vadd.f32 %v2828_v0, %v1423_v41  ;;  %v2173_v46 = vpop.f32.mrb[26].mxu1 }
 0x6e4   :  { %2325 = vrcp.f32 %v1502_v38  ;;  %v1503_v47 = vadd.f32 1.0, %v2314_v42  ;;  %v1765_v48 = vmul.f32 -1.442695, %v1432_v39  ;;  %v1435_v49 = vadd.f32 %v2173_v46, %v2828_v0  ;;  %v1426_v60 = vpop.f32.mrb[27].mxu1 }
 0x6e5   :  { %2327 = vrcp.f32 %v1505_v44  ;;  %v1763_v62 = vmul.f32 -1.442695, %v1424_v45  ;;  %v1427_v50 = vadd.f32 %v2828_v0, %v1426_v60 }
 0x6e6   :  { %2329 = vrcp.f32 %v1503_v47  ;;  %v1766_v51 = vmul.f32 -1.442695, %v1435_v49 }
 0x6e7   :  { %2331 = vpow2.f32 %v1765_v48  ;;  %v1764_v52 = vmul.f32 -1.442695, %v1427_v50 }
 0x6e8   :  { %v2316_v54 = vpop.eup %2315  ;;  %2333 = vpow2.f32 %v1763_v62 }
 0x6e9   :  { %v2318_v59 = vpop.eup %2317  ;;  %v1508_v56 = vadd.f32 1.0, %v2316_v54  ;;  %2335 = vpow2.f32 %v1766_v51 }
 0x6ea   :  { %v2320_v57 = vpop.eup %2319  ;;  %v1506_v58 = vadd.f32 1.0, %v2318_v59  ;;  %2337 = vpow2.f32 %v1764_v52 }
 0x6eb   :  { %v2322_v23 = vpop.eup %2321  ;;  %2339 = vrcp.f32 %v1508_v56  ;;  %v1509_v43 = vadd.f32 1.0, %v2320_v57 }
 0x6ec   :  { %2341 = vrcp.f32 %v1506_v58  ;;  %v1507_v5 = vadd.f32 1.0, %v2322_v23 }
 0x6ed   :  { %v2324_v6 = vpop.eup %2323  ;;  %2343 = vrcp.f32 %v1509_v43 }
 0x6ee   :  { %v2326_v7 = vpop.eup %2325  ;;  %2345 = vrcp.f32 %v1507_v5 }
 0x6ef   :  { %v2328_v8 = vpop.eup %2327 }
 0x6f0   :  { %v2330_v9 = vpop.eup %2329  ;;  %v1811_v10 = vpack.c.bf16 %v2328_v8, %v2324_v6 }
 0x6f1   :  { %v2332_v53 = vpop.eup %2331  ;;  %v1806_v55 = vpack.c.bf16 %v2330_v9, %v2326_v7 }
 0x6f2   :  { %v2334_v11 = vpop.eup %2333  ;;  %1843 = vst [vmem:[#allocation13 + $0x8] sm:$0xff] %v1811_v10   ;;  %v1512_v2 = vadd.f32 1.0, %v2332_v53 }
 0x6f3   :  { %v2336_v4 = vpop.eup %2335  ;;  %1807 = vst [vmem:[#allocation13] sm:$0xff] %v1806_v55   ;;  %v1510_v12 = vadd.f32 1.0, %v2334_v11 }
 0x6f4   :  { %v2338_v13 = vpop.eup %2337  ;;  %2347 = vrcp.f32 %v1512_v2  ;;  %v1513_v14 = vadd.f32 1.0, %v2336_v4 }
 0x6f5   :  { %v2340_v15 = vpop.eup %2339  ;;  %2349 = vrcp.f32 %v1510_v12  ;;  %v1511_v16 = vadd.f32 1.0, %v2338_v13 }
 0x6f6   :  { %v2342_v17 = vpop.eup %2341  ;;  %2351 = vrcp.f32 %v1513_v14 }
 0x6f7   :  { %v2344_v18 = vpop.eup %2343  ;;  %2353 = vrcp.f32 %v1511_v16 }
 0x6f8   :  { %v2346_v19 = vpop.eup %2345  ;;  %v1821_v20 = vpack.c.bf16 %v2344_v18, %v2340_v15 }
 0x6f9   :  { %v1816_v21 = vpack.c.bf16 %v2346_v19, %v2342_v17 }
 0x6fa   :  { %1845 = vst [vmem:[#allocation13 + $0x18] sm:$0xff] %v1821_v20  }
 0x6fb   :  { %1844 = vst [vmem:[#allocation13 + $0x10] sm:$0xff] %v1816_v21  }
 0x6fe   :  { %v2348_v22 = vpop.eup %2347 }
 0x6ff   :  { %v2350_v24 = vpop.eup %2349 }
 0x700   :  { %v2352_v25 = vpop.eup %2351 }
 0x701   :  { %v2354_v26 = vpop.eup %2353  ;;  %v1831_v27 = vpack.c.bf16 %v2352_v25, %v2348_v22 }
 0x702   :  { %v1826_v28 = vpack.c.bf16 %v2354_v26, %v2350_v24 }
 0x703   :  { %1847 = vst [vmem:[#allocation13 + $0x28] sm:$0xff] %v1831_v27  }
 0x704   :  { %1846 = vst [vmem:[#allocation13 + $0x20] sm:$0xff] %v1826_v28  }
 0x796   :  { %v1262_v63 = vpop.f32.mrb[28].mxu0 }
 0x797   :  { %v1269_v30 = vadd.f32 %v1262_v63, %v333_v61  ;;  %v2144_v31 = vpop.f32.mrb[29].mxu0 }
 0x798   :  { %v1265_v32 = vpop.f32.mrb[30].mxu0 }
 0x799   :  { %2355 = vtanh.f32 %v1269_v30  ;;  %v1270_v33 = vadd.f32 %v1265_v32, %v336_v29  ;;  %v2145_v34 = vpop.f32.mrb[31].mxu0 }
 0x79b   :  { %2357 = vtanh.f32 %v1270_v33 }
 0x7a3   :  { %v2356_v35 = vpop.eup %2355 }
 0x7a4   :  { %1276 = vst [vmem:[#allocation14] sm:$0xff] %v2356_v35 }
 0x7a5   :  { %v2358_v36 = vpop.eup %2357 }
 0x7a6   :  { %1277 = vst [vmem:[#allocation14 + $0x8] sm:$0xff] %v2358_v36  ;;  %v1273_v37 = vpack.c.bf16 %v2358_v36, %v2356_v35 }
 0x7a8   :  { %2175 = vmatmul.mubr.bf16.gmra.mrb[28].mxu1 %v1273_v37 }
 0x7a9   :  { %2496 = shalt.err (!%p2493_p2)
}
 0x7aa   :  { %s2497_s9 = scalar_lea.hbm %s2888_s8, 256 }
 0x7ab   :  { %p2498_p3 = scmp.ne.s32.totalorder %s2888_s8, %s2497_s9  ;;  %p2501_p4 = scmp.lt.u32.totalorder %s2497_s9, %s2888_s8 }
 0x7ad   :  { %p2503_p5 = pnand %p2501_p4, %p2498_p3 }
 0x7af   :  { %2506 = shalt.err (!%p2503_p5)
}
 0x7b0   :  { %1653 = dma.vmem_to_hbm [thread:$0]  %s1648_s29, 256, %s2888_s8, [#allocation15], %s2544_s3, %s2544_s3, %s2545_s20  }
 0x7b1   :  { %s2551_s8 = smov [#allocation13]  }
 0x7b2   :  { %s1635_s3 = sshll.u32 %s2551_s8, 4  ;;  %s1636_s3 = int_to_ptr.vmem [resolvable:$true] %s1635_s3 }
 0x7b3   :  { %s2507_s20 = scalar_lea.vmem %s1636_s3, 1024  ;;  %p2512_p7 = scmp.lt.s32.totalorder %s1636_s3, %s1636_s3 }
 0x7b4   :  { %p2508_p6 = scmp.ne.s32.totalorder %s1636_s3, %s2507_s20  ;;  %p2513_p8 = scmp.lt.s32.totalorder %s2507_s20, %s2507_s20 }
 0x7b6   :  { %p2514_p9 = por %p2513_p8, %p2512_p7 }
 0x7b8   :  { %p2515_p10 = pnand %p2514_p9, %p2508_p6 }
 0x87b   :  { %v2176_v40 = vpop.f32.mrb[28].mxu1 }
 0x87c   :  { %v1448_v1 = vadd.f32 %v2176_v40, %v2828_v0  ;;  %v1439_v3 = vpop.f32.mrb[29].mxu1 }
 0x87d   :  { %v1440_v38 = vadd.f32 %v2828_v0, %v1439_v3  ;;  %v2177_v39 = vpop.f32.mrb[30].mxu1 }
 0x87e   :  { %v1769_v41 = vmul.f32 -1.442695, %v1448_v1  ;;  %v1451_v42 = vadd.f32 %v2177_v39, %v2828_v0  ;;  %v1442_v44 = vpop.f32.mrb[31].mxu1 }
 0x87f   :  { %v1767_v45 = vmul.f32 -1.442695, %v1440_v38  ;;  %v1443_v46 = vadd.f32 %v2828_v0, %v1442_v44 }
 0x880   :  { %2359 = vpow2.f32 %v1769_v41  ;;  %v1770_v47 = vmul.f32 -1.442695, %v1451_v42 }
 0x881   :  { %2361 = vpow2.f32 %v1767_v45  ;;  %v1768_v48 = vmul.f32 -1.442695, %v1443_v46 }
 0x882   :  { %2363 = vpow2.f32 %v1770_v47 }
 0x883   :  { %2365 = vpow2.f32 %v1768_v48 }
 0x88a   :  { %v2360_v49 = vpop.eup %2359 }
 0x88b   :  { %v2362_v60 = vpop.eup %2361  ;;  %v1516_v62 = vadd.f32 1.0, %v2360_v49 }
 0x88c   :  { %v2364_v50 = vpop.eup %2363  ;;  %v1514_v51 = vadd.f32 1.0, %v2362_v60 }
 0x88d   :  { %v2366_v52 = vpop.eup %2365  ;;  %2367 = vrcp.f32 %v1516_v62  ;;  %v1517_v54 = vadd.f32 1.0, %v2364_v50 }
 0x88e   :  { %2369 = vrcp.f32 %v1514_v51  ;;  %v1515_v59 = vadd.f32 1.0, %v2366_v52 }
 0x88f   :  { %2371 = vrcp.f32 %v1517_v54 }
 0x890   :  { %2373 = vrcp.f32 %v1515_v59 }
 0x897   :  { %v2368_v56 = vpop.eup %2367 }
 0x898   :  { %v2370_v0 = vpop.eup %2369 }
 0x899   :  { %v2372_v57 = vpop.eup %2371 }
 0x89a   :  { %v2374_v58 = vpop.eup %2373  ;;  %v1841_v23 = vpack.c.bf16 %v2372_v57, %v2368_v56 }
 0x89b   :  { %v1836_v43 = vpack.c.bf16 %v2374_v58, %v2370_v0 }
 0x89c   :  { %1849 = vst [vmem:[#allocation13 + $0x38] sm:$0xff] %v1841_v23  }
 0x89d   :  { %1848 = vst [vmem:[#allocation13 + $0x30] sm:$0xff] %v1836_v43  }
 0x89e   :  { %2518 = shalt.err (!%p2515_p10)
}
 0x89f   :  { %s2519_s18 = scalar_lea.hbm %s2887_s7, 1024 }
 0x8a0   :  { %p2520_p11 = scmp.ne.s32.totalorder %s2887_s7, %s2519_s18  ;;  %p2523_p12 = scmp.lt.u32.totalorder %s2519_s18, %s2887_s7 }
 0x8a2   :  { %p2525_p13 = pnand %p2523_p12, %p2520_p11 }
 0x8a4   :  { %2528 = shalt.err (!%p2525_p13)
}
 0x8a5   :  { %1641 = dma.vmem_to_hbm [thread:$0]  %s1636_s3, 1024, %s2887_s7, [#allocation6], %s2540_s15, %s2540_s15, %s2541_s16  }
 0x8a6   :  { %2535 = dma.done.wait [#allocation6], 1024  }
 0x8a7   :  { %2536 = vsyncadd [#allocation6], 4294966272 }
 0x8a8   :  { %2537 = dma.done.wait [#allocation15], 256  }
 0x8a9   :  { %2538 = vsyncadd [#allocation15], 4294967040 }
 0x8aa   :  { %1660 = vsyncpa [#allocation5], 1 }
 0x8ab   :  { %1661 = vsyncpa [#allocation8], 1 }
 0x8ac   :  { %1662 = vsyncpa [#allocation11], 1 }
 0x8ad   :  { %1663 = vsyncpa [#allocation6], 1 }
 0x8ae   :  { %1664 = vsyncpa [#allocation15], 1 }

</bundles_post_ra>
